<compile_context>
chip_gen: v5e
topology: v5e:2x2
jax: 0.10.0
libtpu: 0.0.40
codegen_flags: <defaults>
</compile_context>

<pallas_src>
import functools

import jax
import jax.numpy as jnp
from jax.experimental import pallas as pl
from jax.experimental.pallas import tpu as pltpu


def _round_up(n, m):
    return ((n + m - 1) // m) * m


def _network_cnn_kernel(w1_ref, w3c_ref, x_ref, wp_ref, w2m_ref, w3_ref, out_ref):
    # w1_ref : SMEM (2*F*3,)      conv1 weights, flattened (o, f, k) row-major
    # w3c_ref: SMEM (1,)          conv3 weight for the previous-weights channel
    # x_ref  : VMEM (F, C, TB, T) raw input tile (batch on sublanes, time on lanes)
    # wp_ref : VMEM (TB, C+1)     previous weights, zero cash column at lane 0
    # w2m_ref: VMEM (2, TO, 20)   conv2 weights as two (TO, 20) matmul operands
    # w3_ref : VMEM (1, 20)       conv3 weights for the 20 conv2 channels
    # out_ref: VMEM (TB, C+1)     softmax output [cash, coin_0..coin_{C-1}]
    F, C, TB, T = x_ref.shape
    TO = T - 2

    w2m0 = w2m_ref[0]                       # (TO, 20)
    w2m1 = w2m_ref[1]                       # (TO, 20)
    w3row = w3_ref[...]                     # (1, 20)
    w3_cash = w3c_ref[0]                    # scalar

    # Hoist the 2*F*3 conv1 scalar weights out of the per-coin loop.
    w1_vals = [w1_ref[i] for i in range(2 * F * 3)]

    # Packed logits tile: lane 0 = cash logit (constant 1.0), lanes 1..C = coins.
    lane = jax.lax.broadcasted_iota(jnp.int32, (TB, C + 1), 1)
    logits = jnp.where(lane == 0, 1.0, 0.0).astype(jnp.float32)

    for c in range(C):
        # conv1 (+ReLU): pure VPU FMAs on in-kernel shifted lane windows.
        # Each window is loaded once and reused for both output channels.
        acc0 = jnp.zeros((TB, TO), jnp.float32)
        acc1 = jnp.zeros((TB, TO), jnp.float32)
        for f in range(F):
            for k in range(3):
                win = x_ref[f, c, :, pl.ds(k, TO)]          # (TB, TO)
                acc0 = acc0 + w1_vals[(0 * F + f) * 3 + k] * win
                acc1 = acc1 + w1_vals[(1 * F + f) * 3 + k] * win
        h0 = jnp.maximum(acc0, 0.0)
        h1 = jnp.maximum(acc1, 0.0)

        # conv2 (+ReLU): MXU matmuls, split-weight form (no channel concat).
        h2 = (jnp.dot(h0, w2m0, preferred_element_type=jnp.float32)
              + jnp.dot(h1, w2m1, preferred_element_type=jnp.float32))
        h2 = jnp.maximum(h2, 0.0)                            # (TB, 20)

        # conv3 (1x1) over the 20 conv2 channels; masked add into lane c+1.
        s_c = jnp.sum(h2 * w3row, axis=-1, keepdims=True)    # (TB, 1)
        logits = logits + jnp.where(lane == c + 1, s_c, 0.0)

    # conv3 previous-weights channel: wp lane 0 is a zero cash column, so this
    # single FMA adds wp[b, c] * w3[20] into exactly the coin lanes.
    logits = logits + wp_ref[...] * w3_cash

    # Exact softmax over [cash, coin_0..coin_{C-1}] (exact divide so the
    # outputs sum to 1 to f32 rounding).
    m = jnp.max(logits, axis=-1, keepdims=True)
    e = jnp.exp(logits - m)
    z = jnp.sum(e, axis=-1, keepdims=True)
    out_ref[...] = e / z


@functools.partial(jax.jit, static_argnames=("batch_tile",))
def network_cnn_forward(x, w_prev, w1, w2, w3, *, batch_tile=128):
    """x: (B, F, C, T); w_prev: (B, C, 1); w1: (2, F, 3); w2: (20, 2, T-2);
    w3: (21,). Returns (B, C+1, 1) softmax over [cash, coin_0..coin_{C-1}]."""
    x = jnp.asarray(x, jnp.float32)
    w_prev = jnp.asarray(w_prev, jnp.float32)
    w1 = jnp.asarray(w1, jnp.float32)
    w2 = jnp.asarray(w2, jnp.float32)
    w3 = jnp.asarray(w3, jnp.float32)

    B, F, C, T = x.shape
    TO = T - 2
    assert w2.shape == (20, 2, TO), "window_size must satisfy conv2 width == T - 2"
    assert w_prev.shape == (B, C, 1), "Number of currencies are not matching"
    assert w1.shape == (2, F, 3) and w3.shape == (21,)

    # Batch tile: default 128 rows on the sublane/matmul-M axis (good vreg
    # pressure point; sweep 64/128/256 if tuning), multiple of 8, right-sized
    # so the last grid step is not mostly padding, and >= 2 steps when B allows
    # it so v7x's second TensorCore gets work.
    tb = max(8, (min(batch_tile, _round_up(B, 8)) // 8) * 8)
    if B >= 16:
        tb = min(tb, _round_up(-(-B // 2), 8))
    n_steps = -(-B // tb)
    tb = _round_up(-(-B // n_steps), 8)
    b_pad = tb * n_steps

    # Raw input tile (no im2col): batch on the sublane axis, time on lanes.
    # NOTE: on v6e/v7x, shipping x as bfloat16 (f32 accumulate in-kernel) would
    # halve the remaining HBM traffic; kept f32 here for v5e and exact parity.
    xt = jnp.transpose(x, (1, 2, 0, 3))                                 # (F, C, B, T)
    xt = jnp.pad(xt, ((0, 0), (0, 0), (0, b_pad - B), (0, 0)))          # (F, C, b_pad, T)

    # Previous weights as one lane-dense 2-D slab with a zero cash column.
    wp = jnp.pad(w_prev[:, :, 0], ((0, b_pad - B), (1, 0)))             # (b_pad, C+1)

    w1_flat = w1.reshape(-1)                                            # (2*F*3,)
    w2m = jnp.transpose(w2, (1, 2, 0))                                  # (2, TO, 20)
    w3_coin = w3[:20].reshape(1, 20)
    w3_cash = w3[20:21]                                                 # (1,)

    grid_spec = pltpu.PrefetchScalarGridSpec(
        num_scalar_prefetch=0,
        grid=(n_steps,),
        in_specs=[
            pl.BlockSpec(memory_space=pltpu.MemorySpace.SMEM),          # conv1 scalars
            pl.BlockSpec(memory_space=pltpu.MemorySpace.SMEM),          # conv3 cash w
            pl.BlockSpec((F, C, tb, T), lambda i: (0, 0, i, 0)),        # raw x tile
            pl.BlockSpec((tb, C + 1), lambda i: (i, 0)),                # prev weights
            pl.BlockSpec((2, TO, 20), lambda i: (0, 0, 0)),             # conv2 weights
            pl.BlockSpec((1, 20), lambda i: (0, 0)),                    # conv3 weights
        ],
        out_specs=pl.BlockSpec((tb, C + 1), lambda i: (i, 0)),
    )
    out2d = pl.pallas_call(
        _network_cnn_kernel,
        out_shape=jax.ShapeDtypeStruct((b_pad, C + 1), jnp.float32),
        grid_spec=grid_spec,
        compiler_params=pltpu.CompilerParams(
            dimension_semantics=("parallel",)),                         # both TCs on v7x
    )(w1_flat, w3_cash, xt, wp, w2m, w3_coin)

    return out2d[:B, :, None]                                           # (B, C+1, 1)


def network_cnn_reference(x, w_prev, w1, w2, w3):
    """Pure-JAX reference with identical math (validation only)."""
    B, F, C, T = x.shape
    TO = T - 2
    cols = jnp.stack([x[:, :, :, k:k + TO] for k in range(3)], axis=-1)     # (B,F,C,TO,3)
    c1 = jnp.maximum(jnp.einsum('bfctk,ofk->boct', cols, w1), 0.0)          # (B,2,C,TO)
    c2 = jnp.maximum(jnp.einsum('boct,pot->bpc', c1, w2), 0.0)              # (B,20,C)
    feat = jnp.concatenate([c2, jnp.transpose(w_prev, (0, 2, 1))], axis=1)  # (B,21,C)
    s = jnp.einsum('bjc,j->bc', feat, w3)                                   # (B,C)
    logits = jnp.concatenate([jnp.ones((B, 1), jnp.float32), s], axis=1)    # (B,C+1)
    return jax.nn.softmax(logits, axis=1)[:, :, None]


if __name__ == "__main__":
    # feature_number=3, num_currencies=4, window_size=50 (the module's (1,48)
    # conv2 kernel requires window_size - 2 == 48).
    B, F, C, T = 2, 3, 4, 50
    key = jax.random.PRNGKey(0)
    kx, kw, k1, k2, k3 = jax.random.split(key, 5)

    x = jax.random.normal(kx, (B, F, C, T), dtype=jnp.float32)
    w_prev = jax.nn.softmax(
        jax.random.normal(kw, (B, C, 1), dtype=jnp.float32), axis=1)

    # Synthetic parameters with the same shapes as the nn.Conv2d weights
    # (trivial kernel-height-1 axis squeezed out).
    w1 = 0.2 * jax.random.normal(k1, (2, F, 3), dtype=jnp.float32)        # conv1
    w2 = 0.1 * jax.random.normal(k2, (20, 2, T - 2), dtype=jnp.float32)   # conv2
    w3 = 0.2 * jax.random.normal(k3, (21,), dtype=jnp.float32)            # conv3

    out = jax.block_until_ready(network_cnn_forward(x, w_prev, w1, w2, w3))
    ref = network_cnn_reference(x, w_prev, w1, w2, w3)

    assert out.shape == (B, C + 1, 1)
    # out-vs-ref tolerance covers default MXU matmul precision on hardware.
    assert jnp.allclose(out, ref, atol=2e-3, rtol=2e-3)
    # Normalization is exact now (plain divide in the kernel softmax).
    assert jnp.allclose(jnp.sum(out[:, :, 0], axis=1), 1.0, atol=1e-4)
    print("KERNEL_OK")
</pallas_src>

<mosaic_0001>
module attributes {stable_mosaic.version = 11 : i64} {
  func.func @_network_cnn_kernel(%arg0: i32, %arg1: memref<18xf32, #tpu.memory_space<smem>>, %arg2: memref<1xf32, #tpu.memory_space<smem>>, %arg3: memref<3x4x8x50xf32, #tpu.memory_space<vmem>>, %arg4: memref<8x5xf32, #tpu.memory_space<vmem>>, %arg5: memref<2x48x20xf32, #tpu.memory_space<vmem>>, %arg6: memref<1x20xf32, #tpu.memory_space<vmem>>, %arg7: memref<8x5xf32, #tpu.memory_space<vmem>>) attributes {dimension_semantics = [#tpu.dimension_semantics<parallel>], iteration_bounds = array<i64: 1>, scalar_prefetch = 0 : i64, scratch_operands = 0 : i64, tpu.core_type = #tpu.core_type<tc>, window_params = [{transform_indices = @transform_0, window_bounds = array<i64: 18>}, {transform_indices = @transform_1, window_bounds = array<i64: 1>}, {transform_indices = @transform_2, window_bounds = array<i64: 3, 4, 8, 50>}, {transform_indices = @transform_3, window_bounds = array<i64: 8, 5>}, {pipeline_mode = #tpu.pipeline_mode<synchronous>, transform_indices = @transform_4, window_bounds = array<i64: 2, 48, 20>}, {pipeline_mode = #tpu.pipeline_mode<synchronous>, transform_indices = @transform_5, window_bounds = array<i64: 1, 20>}, {transform_indices = @transform_6, window_bounds = array<i64: 8, 5>}]} {
    %c0 = arith.constant 0 : index
    %c0_0 = arith.constant 0 : index
    %c0_1 = arith.constant 0 : index
    %0 = vector.load %arg5[%c0, %c0_0, %c0_1] : memref<2x48x20xf32, #tpu.memory_space<vmem>>, vector<1x48x20xf32>
    %1 = vector.shape_cast %0 : vector<1x48x20xf32> to vector<48x20xf32>
    %c1 = arith.constant 1 : index
    %c0_2 = arith.constant 0 : index
    %c0_3 = arith.constant 0 : index
    %2 = vector.load %arg5[%c1, %c0_2, %c0_3] : memref<2x48x20xf32, #tpu.memory_space<vmem>>, vector<1x48x20xf32>
    %3 = vector.shape_cast %2 : vector<1x48x20xf32> to vector<48x20xf32>
    %c0_4 = arith.constant 0 : index
    %c0_5 = arith.constant 0 : index
    %4 = vector.load %arg6[%c0_4, %c0_5] : memref<1x20xf32, #tpu.memory_space<vmem>>, vector<1x20xf32>
    %c0_6 = arith.constant 0 : index
    %5 = memref.load %arg2[%c0_6] : memref<1xf32, #tpu.memory_space<smem>>
    %c0_7 = arith.constant 0 : index
    %6 = memref.load %arg1[%c0_7] : memref<18xf32, #tpu.memory_space<smem>>
    %c1_8 = arith.constant 1 : index
    %7 = memref.load %arg1[%c1_8] : memref<18xf32, #tpu.memory_space<smem>>
    %c2 = arith.constant 2 : index
    %8 = memref.load %arg1[%c2] : memref<18xf32, #tpu.memory_space<smem>>
    %c3 = arith.constant 3 : index
    %9 = memref.load %arg1[%c3] : memref<18xf32, #tpu.memory_space<smem>>
    %c4 = arith.constant 4 : index
    %10 = memref.load %arg1[%c4] : memref<18xf32, #tpu.memory_space<smem>>
    %c5 = arith.constant 5 : index
    %11 = memref.load %arg1[%c5] : memref<18xf32, #tpu.memory_space<smem>>
    %c6 = arith.constant 6 : index
    %12 = memref.load %arg1[%c6] : memref<18xf32, #tpu.memory_space<smem>>
    %c7 = arith.constant 7 : index
    %13 = memref.load %arg1[%c7] : memref<18xf32, #tpu.memory_space<smem>>
    %c8 = arith.constant 8 : index
    %14 = memref.load %arg1[%c8] : memref<18xf32, #tpu.memory_space<smem>>
    %c9 = arith.constant 9 : index
    %15 = memref.load %arg1[%c9] : memref<18xf32, #tpu.memory_space<smem>>
    %c10 = arith.constant 10 : index
    %16 = memref.load %arg1[%c10] : memref<18xf32, #tpu.memory_space<smem>>
    %c11 = arith.constant 11 : index
    %17 = memref.load %arg1[%c11] : memref<18xf32, #tpu.memory_space<smem>>
    %c12 = arith.constant 12 : index
    %18 = memref.load %arg1[%c12] : memref<18xf32, #tpu.memory_space<smem>>
    %c13 = arith.constant 13 : index
    %19 = memref.load %arg1[%c13] : memref<18xf32, #tpu.memory_space<smem>>
    %c14 = arith.constant 14 : index
    %20 = memref.load %arg1[%c14] : memref<18xf32, #tpu.memory_space<smem>>
    %c15 = arith.constant 15 : index
    %21 = memref.load %arg1[%c15] : memref<18xf32, #tpu.memory_space<smem>>
    %c16 = arith.constant 16 : index
    %22 = memref.load %arg1[%c16] : memref<18xf32, #tpu.memory_space<smem>>
    %c17 = arith.constant 17 : index
    %23 = memref.load %arg1[%c17] : memref<18xf32, #tpu.memory_space<smem>>
    %24 = tpu.iota {dimensions = array<i32: 1>} : vector<8x5xi32>
    %c0_i32 = arith.constant 0 : i32
    %25 = vector.broadcast %c0_i32 : i32 to vector<8x5xi32>
    %26 = arith.cmpi eq, %24, %25 : vector<8x5xi32>
    %cst = arith.constant 1.000000e+00 : f32
    %cst_9 = arith.constant 0.000000e+00 : f32
    %27 = vector.broadcast %cst : f32 to vector<8x5xf32>
    %28 = vector.broadcast %cst_9 : f32 to vector<8x5xf32>
    %29 = arith.select %26, %27, %28 : vector<8x5xi1>, vector<8x5xf32>
    %cst_10 = arith.constant 0.000000e+00 : f32
    %30 = vector.broadcast %cst_10 : f32 to vector<8x48xf32>
    %cst_11 = arith.constant 0.000000e+00 : f32
    %31 = vector.broadcast %cst_11 : f32 to vector<8x48xf32>
    %c0_12 = arith.constant 0 : index
    %c0_13 = arith.constant 0 : index
    %c0_14 = arith.constant 0 : index
    %c0_15 = arith.constant 0 : index
    %32 = vector.load %arg3[%c0_12, %c0_13, %c0_14, %c0_15] : memref<3x4x8x50xf32, #tpu.memory_space<vmem>>, vector<1x1x8x48xf32>
    %33 = vector.shape_cast %32 : vector<1x1x8x48xf32> to vector<8x48xf32>
    %34 = vector.broadcast %6 : f32 to vector<8x48xf32>
    %35 = arith.mulf %34, %33 : vector<8x48xf32>
    %36 = arith.addf %30, %35 : vector<8x48xf32>
    %37 = vector.broadcast %15 : f32 to vector<8x48xf32>
    %38 = arith.mulf %37, %33 : vector<8x48xf32>
    %39 = arith.addf %31, %38 : vector<8x48xf32>
    %c0_16 = arith.constant 0 : index
    %c0_17 = arith.constant 0 : index
    %c0_18 = arith.constant 0 : index
    %c1_19 = arith.constant 1 : index
    %40 = vector.load %arg3[%c0_16, %c0_17, %c0_18, %c1_19] : memref<3x4x8x50xf32, #tpu.memory_space<vmem>>, vector<1x1x8x48xf32>
    %41 = vector.shape_cast %40 : vector<1x1x8x48xf32> to vector<8x48xf32>
    %42 = vector.broadcast %7 : f32 to vector<8x48xf32>
    %43 = arith.mulf %42, %41 : vector<8x48xf32>
    %44 = arith.addf %36, %43 : vector<8x48xf32>
    %45 = vector.broadcast %16 : f32 to vector<8x48xf32>
    %46 = arith.mulf %45, %41 : vector<8x48xf32>
    %47 = arith.addf %39, %46 : vector<8x48xf32>
    %c0_20 = arith.constant 0 : index
    %c0_21 = arith.constant 0 : index
    %c0_22 = arith.constant 0 : index
    %c2_23 = arith.constant 2 : index
    %48 = vector.load %arg3[%c0_20, %c0_21, %c0_22, %c2_23] : memref<3x4x8x50xf32, #tpu.memory_space<vmem>>, vector<1x1x8x48xf32>
    %49 = vector.shape_cast %48 : vector<1x1x8x48xf32> to vector<8x48xf32>
    %50 = vector.broadcast %8 : f32 to vector<8x48xf32>
    %51 = arith.mulf %50, %49 : vector<8x48xf32>
    %52 = arith.addf %44, %51 : vector<8x48xf32>
    %53 = vector.broadcast %17 : f32 to vector<8x48xf32>
    %54 = arith.mulf %53, %49 : vector<8x48xf32>
    %55 = arith.addf %47, %54 : vector<8x48xf32>
    %c1_24 = arith.constant 1 : index
    %c0_25 = arith.constant 0 : index
    %c0_26 = arith.constant 0 : index
    %c0_27 = arith.constant 0 : index
    %56 = vector.load %arg3[%c1_24, %c0_25, %c0_26, %c0_27] : memref<3x4x8x50xf32, #tpu.memory_space<vmem>>, vector<1x1x8x48xf32>
    %57 = vector.shape_cast %56 : vector<1x1x8x48xf32> to vector<8x48xf32>
    %58 = vector.broadcast %9 : f32 to vector<8x48xf32>
    %59 = arith.mulf %58, %57 : vector<8x48xf32>
    %60 = arith.addf %52, %59 : vector<8x48xf32>
    %61 = vector.broadcast %18 : f32 to vector<8x48xf32>
    %62 = arith.mulf %61, %57 : vector<8x48xf32>
    %63 = arith.addf %55, %62 : vector<8x48xf32>
    %c1_28 = arith.constant 1 : index
    %c0_29 = arith.constant 0 : index
    %c0_30 = arith.constant 0 : index
    %c1_31 = arith.constant 1 : index
    %64 = vector.load %arg3[%c1_28, %c0_29, %c0_30, %c1_31] : memref<3x4x8x50xf32, #tpu.memory_space<vmem>>, vector<1x1x8x48xf32>
    %65 = vector.shape_cast %64 : vector<1x1x8x48xf32> to vector<8x48xf32>
    %66 = vector.broadcast %10 : f32 to vector<8x48xf32>
    %67 = arith.mulf %66, %65 : vector<8x48xf32>
    %68 = arith.addf %60, %67 : vector<8x48xf32>
    %69 = vector.broadcast %19 : f32 to vector<8x48xf32>
    %70 = arith.mulf %69, %65 : vector<8x48xf32>
    %71 = arith.addf %63, %70 : vector<8x48xf32>
    %c1_32 = arith.constant 1 : index
    %c0_33 = arith.constant 0 : index
    %c0_34 = arith.constant 0 : index
    %c2_35 = arith.constant 2 : index
    %72 = vector.load %arg3[%c1_32, %c0_33, %c0_34, %c2_35] : memref<3x4x8x50xf32, #tpu.memory_space<vmem>>, vector<1x1x8x48xf32>
    %73 = vector.shape_cast %72 : vector<1x1x8x48xf32> to vector<8x48xf32>
    %74 = vector.broadcast %11 : f32 to vector<8x48xf32>
    %75 = arith.mulf %74, %73 : vector<8x48xf32>
    %76 = arith.addf %68, %75 : vector<8x48xf32>
    %77 = vector.broadcast %20 : f32 to vector<8x48xf32>
    %78 = arith.mulf %77, %73 : vector<8x48xf32>
    %79 = arith.addf %71, %78 : vector<8x48xf32>
    %c2_36 = arith.constant 2 : index
    %c0_37 = arith.constant 0 : index
    %c0_38 = arith.constant 0 : index
    %c0_39 = arith.constant 0 : index
    %80 = vector.load %arg3[%c2_36, %c0_37, %c0_38, %c0_39] : memref<3x4x8x50xf32, #tpu.memory_space<vmem>>, vector<1x1x8x48xf32>
    %81 = vector.shape_cast %80 : vector<1x1x8x48xf32> to vector<8x48xf32>
    %82 = vector.broadcast %12 : f32 to vector<8x48xf32>
    %83 = arith.mulf %82, %81 : vector<8x48xf32>
    %84 = arith.addf %76, %83 : vector<8x48xf32>
    %85 = vector.broadcast %21 : f32 to vector<8x48xf32>
    %86 = arith.mulf %85, %81 : vector<8x48xf32>
    %87 = arith.addf %79, %86 : vector<8x48xf32>
    %c2_40 = arith.constant 2 : index
    %c0_41 = arith.constant 0 : index
    %c0_42 = arith.constant 0 : index
    %c1_43 = arith.constant 1 : index
    %88 = vector.load %arg3[%c2_40, %c0_41, %c0_42, %c1_43] : memref<3x4x8x50xf32, #tpu.memory_space<vmem>>, vector<1x1x8x48xf32>
    %89 = vector.shape_cast %88 : vector<1x1x8x48xf32> to vector<8x48xf32>
    %90 = vector.broadcast %13 : f32 to vector<8x48xf32>
    %91 = arith.mulf %90, %89 : vector<8x48xf32>
    %92 = arith.addf %84, %91 : vector<8x48xf32>
    %93 = vector.broadcast %22 : f32 to vector<8x48xf32>
    %94 = arith.mulf %93, %89 : vector<8x48xf32>
    %95 = arith.addf %87, %94 : vector<8x48xf32>
    %c2_44 = arith.constant 2 : index
    %c0_45 = arith.constant 0 : index
    %c0_46 = arith.constant 0 : index
    %c2_47 = arith.constant 2 : index
    %96 = vector.load %arg3[%c2_44, %c0_45, %c0_46, %c2_47] : memref<3x4x8x50xf32, #tpu.memory_space<vmem>>, vector<1x1x8x48xf32>
    %97 = vector.shape_cast %96 : vector<1x1x8x48xf32> to vector<8x48xf32>
    %98 = vector.broadcast %14 : f32 to vector<8x48xf32>
    %99 = arith.mulf %98, %97 : vector<8x48xf32>
    %100 = arith.addf %92, %99 : vector<8x48xf32>
    %101 = vector.broadcast %23 : f32 to vector<8x48xf32>
    %102 = arith.mulf %101, %97 : vector<8x48xf32>
    %103 = arith.addf %95, %102 : vector<8x48xf32>
    %cst_48 = arith.constant 0.000000e+00 : f32
    %104 = vector.broadcast %cst_48 : f32 to vector<8x48xf32>
    %105 = arith.maximumf %100, %104 : vector<8x48xf32>
    %cst_49 = arith.constant 0.000000e+00 : f32
    %106 = vector.broadcast %cst_49 : f32 to vector<8x48xf32>
    %107 = arith.maximumf %103, %106 : vector<8x48xf32>
    %cst_50 = arith.constant dense<0.000000e+00> : vector<8x20xf32>
    %108 = tpu.matmul %105, %1, %cst_50 {dimension_numbers = #tpu.dot_dimension_numbers<[1], [0], [0], [1], [0, 0, 1, 1], [], []>} : vector<8x48xf32>, vector<48x20xf32>, vector<8x20xf32> -> vector<8x20xf32>
    %cst_51 = arith.constant dense<0.000000e+00> : vector<8x20xf32>
    %109 = tpu.matmul %107, %3, %cst_51 {dimension_numbers = #tpu.dot_dimension_numbers<[1], [0], [0], [1], [0, 0, 1, 1], [], []>} : vector<8x48xf32>, vector<48x20xf32>, vector<8x20xf32> -> vector<8x20xf32>
    %110 = arith.addf %108, %109 : vector<8x20xf32>
    %cst_52 = arith.constant 0.000000e+00 : f32
    %111 = vector.broadcast %cst_52 : f32 to vector<8x20xf32>
    %112 = arith.maximumf %110, %111 : vector<8x20xf32>
    %113 = vector.broadcast %4 : vector<1x20xf32> to vector<8x20xf32>
    %114 = arith.mulf %112, %113 : vector<8x20xf32>
    %cst_53 = arith.constant dense<0.000000e+00> : vector<8xf32>
    %115 = vector.multi_reduction <add>, %114, %cst_53 [1] : vector<8x20xf32> to vector<8xf32>
    %116 = vector.shape_cast %115 : vector<8xf32> to vector<8x1xf32>
    %c1_i32 = arith.constant 1 : i32
    %117 = vector.broadcast %c1_i32 : i32 to vector<8x5xi32>
    %118 = arith.cmpi eq, %24, %117 : vector<8x5xi32>
    %cst_54 = arith.constant 0.000000e+00 : f32
    %119 = vector.shape_cast %116 : vector<8x1xf32> to vector<8x1xf32>
    %120 = vector.broadcast %119 : vector<8x1xf32> to vector<8x5xf32>
    %121 = vector.broadcast %cst_54 : f32 to vector<8x5xf32>
    %122 = arith.select %118, %120, %121 : vector<8x5xi1>, vector<8x5xf32>
    %123 = arith.addf %29, %122 : vector<8x5xf32>
    %cst_55 = arith.constant 0.000000e+00 : f32
    %124 = vector.broadcast %cst_55 : f32 to vector<8x48xf32>
    %cst_56 = arith.constant 0.000000e+00 : f32
    %125 = vector.broadcast %cst_56 : f32 to vector<8x48xf32>
    %c0_57 = arith.constant 0 : index
    %c1_58 = arith.constant 1 : index
    %c0_59 = arith.constant 0 : index
    %c0_60 = arith.constant 0 : index
    %126 = vector.load %arg3[%c0_57, %c1_58, %c0_59, %c0_60] : memref<3x4x8x50xf32, #tpu.memory_space<vmem>>, vector<1x1x8x48xf32>
    %127 = vector.shape_cast %126 : vector<1x1x8x48xf32> to vector<8x48xf32>
    %128 = vector.broadcast %6 : f32 to vector<8x48xf32>
    %129 = arith.mulf %128, %127 : vector<8x48xf32>
    %130 = arith.addf %124, %129 : vector<8x48xf32>
    %131 = vector.broadcast %15 : f32 to vector<8x48xf32>
    %132 = arith.mulf %131, %127 : vector<8x48xf32>
    %133 = arith.addf %125, %132 : vector<8x48xf32>
    %c0_61 = arith.constant 0 : index
    %c1_62 = arith.constant 1 : index
    %c0_63 = arith.constant 0 : index
    %c1_64 = arith.constant 1 : index
    %134 = vector.load %arg3[%c0_61, %c1_62, %c0_63, %c1_64] : memref<3x4x8x50xf32, #tpu.memory_space<vmem>>, vector<1x1x8x48xf32>
    %135 = vector.shape_cast %134 : vector<1x1x8x48xf32> to vector<8x48xf32>
    %136 = vector.broadcast %7 : f32 to vector<8x48xf32>
    %137 = arith.mulf %136, %135 : vector<8x48xf32>
    %138 = arith.addf %130, %137 : vector<8x48xf32>
    %139 = vector.broadcast %16 : f32 to vector<8x48xf32>
    %140 = arith.mulf %139, %135 : vector<8x48xf32>
    %141 = arith.addf %133, %140 : vector<8x48xf32>
    %c0_65 = arith.constant 0 : index
    %c1_66 = arith.constant 1 : index
    %c0_67 = arith.constant 0 : index
    %c2_68 = arith.constant 2 : index
    %142 = vector.load %arg3[%c0_65, %c1_66, %c0_67, %c2_68] : memref<3x4x8x50xf32, #tpu.memory_space<vmem>>, vector<1x1x8x48xf32>
    %143 = vector.shape_cast %142 : vector<1x1x8x48xf32> to vector<8x48xf32>
    %144 = vector.broadcast %8 : f32 to vector<8x48xf32>
    %145 = arith.mulf %144, %143 : vector<8x48xf32>
    %146 = arith.addf %138, %145 : vector<8x48xf32>
    %147 = vector.broadcast %17 : f32 to vector<8x48xf32>
    %148 = arith.mulf %147, %143 : vector<8x48xf32>
    %149 = arith.addf %141, %148 : vector<8x48xf32>
    %c1_69 = arith.constant 1 : index
    %c1_70 = arith.constant 1 : index
    %c0_71 = arith.constant 0 : index
    %c0_72 = arith.constant 0 : index
    %150 = vector.load %arg3[%c1_69, %c1_70, %c0_71, %c0_72] : memref<3x4x8x50xf32, #tpu.memory_space<vmem>>, vector<1x1x8x48xf32>
    %151 = vector.shape_cast %150 : vector<1x1x8x48xf32> to vector<8x48xf32>
    %152 = vector.broadcast %9 : f32 to vector<8x48xf32>
    %153 = arith.mulf %152, %151 : vector<8x48xf32>
    %154 = arith.addf %146, %153 : vector<8x48xf32>
    %155 = vector.broadcast %18 : f32 to vector<8x48xf32>
    %156 = arith.mulf %155, %151 : vector<8x48xf32>
    %157 = arith.addf %149, %156 : vector<8x48xf32>
    %c1_73 = arith.constant 1 : index
    %c1_74 = arith.constant 1 : index
    %c0_75 = arith.constant 0 : index
    %c1_76 = arith.constant 1 : index
    %158 = vector.load %arg3[%c1_73, %c1_74, %c0_75, %c1_76] : memref<3x4x8x50xf32, #tpu.memory_space<vmem>>, vector<1x1x8x48xf32>
    %159 = vector.shape_cast %158 : vector<1x1x8x48xf32> to vector<8x48xf32>
    %160 = vector.broadcast %10 : f32 to vector<8x48xf32>
    %161 = arith.mulf %160, %159 : vector<8x48xf32>
    %162 = arith.addf %154, %161 : vector<8x48xf32>
    %163 = vector.broadcast %19 : f32 to vector<8x48xf32>
    %164 = arith.mulf %163, %159 : vector<8x48xf32>
    %165 = arith.addf %157, %164 : vector<8x48xf32>
    %c1_77 = arith.constant 1 : index
    %c1_78 = arith.constant 1 : index
    %c0_79 = arith.constant 0 : index
    %c2_80 = arith.constant 2 : index
    %166 = vector.load %arg3[%c1_77, %c1_78, %c0_79, %c2_80] : memref<3x4x8x50xf32, #tpu.memory_space<vmem>>, vector<1x1x8x48xf32>
    %167 = vector.shape_cast %166 : vector<1x1x8x48xf32> to vector<8x48xf32>
    %168 = vector.broadcast %11 : f32 to vector<8x48xf32>
    %169 = arith.mulf %168, %167 : vector<8x48xf32>
    %170 = arith.addf %162, %169 : vector<8x48xf32>
    %171 = vector.broadcast %20 : f32 to vector<8x48xf32>
    %172 = arith.mulf %171, %167 : vector<8x48xf32>
    %173 = arith.addf %165, %172 : vector<8x48xf32>
    %c2_81 = arith.constant 2 : index
    %c1_82 = arith.constant 1 : index
    %c0_83 = arith.constant 0 : index
    %c0_84 = arith.constant 0 : index
    %174 = vector.load %arg3[%c2_81, %c1_82, %c0_83, %c0_84] : memref<3x4x8x50xf32, #tpu.memory_space<vmem>>, vector<1x1x8x48xf32>
    %175 = vector.shape_cast %174 : vector<1x1x8x48xf32> to vector<8x48xf32>
    %176 = vector.broadcast %12 : f32 to vector<8x48xf32>
    %177 = arith.mulf %176, %175 : vector<8x48xf32>
    %178 = arith.addf %170, %177 : vector<8x48xf32>
    %179 = vector.broadcast %21 : f32 to vector<8x48xf32>
    %180 = arith.mulf %179, %175 : vector<8x48xf32>
    %181 = arith.addf %173, %180 : vector<8x48xf32>
    %c2_85 = arith.constant 2 : index
    %c1_86 = arith.constant 1 : index
    %c0_87 = arith.constant 0 : index
    %c1_88 = arith.constant 1 : index
    %182 = vector.load %arg3[%c2_85, %c1_86, %c0_87, %c1_88] : memref<3x4x8x50xf32, #tpu.memory_space<vmem>>, vector<1x1x8x48xf32>
    %183 = vector.shape_cast %182 : vector<1x1x8x48xf32> to vector<8x48xf32>
    %184 = vector.broadcast %13 : f32 to vector<8x48xf32>
    %185 = arith.mulf %184, %183 : vector<8x48xf32>
    %186 = arith.addf %178, %185 : vector<8x48xf32>
    %187 = vector.broadcast %22 : f32 to vector<8x48xf32>
    %188 = arith.mulf %187, %183 : vector<8x48xf32>
    %189 = arith.addf %181, %188 : vector<8x48xf32>
    %c2_89 = arith.constant 2 : index
    %c1_90 = arith.constant 1 : index
    %c0_91 = arith.constant 0 : index
    %c2_92 = arith.constant 2 : index
    %190 = vector.load %arg3[%c2_89, %c1_90, %c0_91, %c2_92] : memref<3x4x8x50xf32, #tpu.memory_space<vmem>>, vector<1x1x8x48xf32>
    %191 = vector.shape_cast %190 : vector<1x1x8x48xf32> to vector<8x48xf32>
    %192 = vector.broadcast %14 : f32 to vector<8x48xf32>
    %193 = arith.mulf %192, %191 : vector<8x48xf32>
    %194 = arith.addf %186, %193 : vector<8x48xf32>
    %195 = vector.broadcast %23 : f32 to vector<8x48xf32>
    %196 = arith.mulf %195, %191 : vector<8x48xf32>
    %197 = arith.addf %189, %196 : vector<8x48xf32>
    %cst_93 = arith.constant 0.000000e+00 : f32
    %198 = vector.broadcast %cst_93 : f32 to vector<8x48xf32>
    %199 = arith.maximumf %194, %198 : vector<8x48xf32>
    %cst_94 = arith.constant 0.000000e+00 : f32
    %200 = vector.broadcast %cst_94 : f32 to vector<8x48xf32>
    %201 = arith.maximumf %197, %200 : vector<8x48xf32>
    %cst_95 = arith.constant dense<0.000000e+00> : vector<8x20xf32>
    %202 = tpu.matmul %199, %1, %cst_95 {dimension_numbers = #tpu.dot_dimension_numbers<[1], [0], [0], [1], [0, 0, 1, 1], [], []>} : vector<8x48xf32>, vector<48x20xf32>, vector<8x20xf32> -> vector<8x20xf32>
    %cst_96 = arith.constant dense<0.000000e+00> : vector<8x20xf32>
    %203 = tpu.matmul %201, %3, %cst_96 {dimension_numbers = #tpu.dot_dimension_numbers<[1], [0], [0], [1], [0, 0, 1, 1], [], []>} : vector<8x48xf32>, vector<48x20xf32>, vector<8x20xf32> -> vector<8x20xf32>
    %204 = arith.addf %202, %203 : vector<8x20xf32>
    %cst_97 = arith.constant 0.000000e+00 : f32
    %205 = vector.broadcast %cst_97 : f32 to vector<8x20xf32>
    %206 = arith.maximumf %204, %205 : vector<8x20xf32>
    %207 = vector.broadcast %4 : vector<1x20xf32> to vector<8x20xf32>
    %208 = arith.mulf %206, %207 : vector<8x20xf32>
    %cst_98 = arith.constant dense<0.000000e+00> : vector<8xf32>
    %209 = vector.multi_reduction <add>, %208, %cst_98 [1] : vector<8x20xf32> to vector<8xf32>
    %210 = vector.shape_cast %209 : vector<8xf32> to vector<8x1xf32>
    %c2_i32 = arith.constant 2 : i32
    %211 = vector.broadcast %c2_i32 : i32 to vector<8x5xi32>
    %212 = arith.cmpi eq, %24, %211 : vector<8x5xi32>
    %cst_99 = arith.constant 0.000000e+00 : f32
    %213 = vector.shape_cast %210 : vector<8x1xf32> to vector<8x1xf32>
    %214 = vector.broadcast %213 : vector<8x1xf32> to vector<8x5xf32>
    %215 = vector.broadcast %cst_99 : f32 to vector<8x5xf32>
    %216 = arith.select %212, %214, %215 : vector<8x5xi1>, vector<8x5xf32>
    %217 = arith.addf %123, %216 : vector<8x5xf32>
    %cst_100 = arith.constant 0.000000e+00 : f32
    %218 = vector.broadcast %cst_100 : f32 to vector<8x48xf32>
    %cst_101 = arith.constant 0.000000e+00 : f32
    %219 = vector.broadcast %cst_101 : f32 to vector<8x48xf32>
    %c0_102 = arith.constant 0 : index
    %c2_103 = arith.constant 2 : index
    %c0_104 = arith.constant 0 : index
    %c0_105 = arith.constant 0 : index
    %220 = vector.load %arg3[%c0_102, %c2_103, %c0_104, %c0_105] : memref<3x4x8x50xf32, #tpu.memory_space<vmem>>, vector<1x1x8x48xf32>
    %221 = vector.shape_cast %220 : vector<1x1x8x48xf32> to vector<8x48xf32>
    %222 = vector.broadcast %6 : f32 to vector<8x48xf32>
    %223 = arith.mulf %222, %221 : vector<8x48xf32>
    %224 = arith.addf %218, %223 : vector<8x48xf32>
    %225 = vector.broadcast %15 : f32 to vector<8x48xf32>
    %226 = arith.mulf %225, %221 : vector<8x48xf32>
    %227 = arith.addf %219, %226 : vector<8x48xf32>
    %c0_106 = arith.constant 0 : index
    %c2_107 = arith.constant 2 : index
    %c0_108 = arith.constant 0 : index
    %c1_109 = arith.constant 1 : index
    %228 = vector.load %arg3[%c0_106, %c2_107, %c0_108, %c1_109] : memref<3x4x8x50xf32, #tpu.memory_space<vmem>>, vector<1x1x8x48xf32>
    %229 = vector.shape_cast %228 : vector<1x1x8x48xf32> to vector<8x48xf32>
    %230 = vector.broadcast %7 : f32 to vector<8x48xf32>
    %231 = arith.mulf %230, %229 : vector<8x48xf32>
    %232 = arith.addf %224, %231 : vector<8x48xf32>
    %233 = vector.broadcast %16 : f32 to vector<8x48xf32>
    %234 = arith.mulf %233, %229 : vector<8x48xf32>
    %235 = arith.addf %227, %234 : vector<8x48xf32>
    %c0_110 = arith.constant 0 : index
    %c2_111 = arith.constant 2 : index
    %c0_112 = arith.constant 0 : index
    %c2_113 = arith.constant 2 : index
    %236 = vector.load %arg3[%c0_110, %c2_111, %c0_112, %c2_113] : memref<3x4x8x50xf32, #tpu.memory_space<vmem>>, vector<1x1x8x48xf32>
    %237 = vector.shape_cast %236 : vector<1x1x8x48xf32> to vector<8x48xf32>
    %238 = vector.broadcast %8 : f32 to vector<8x48xf32>
    %239 = arith.mulf %238, %237 : vector<8x48xf32>
    %240 = arith.addf %232, %239 : vector<8x48xf32>
    %241 = vector.broadcast %17 : f32 to vector<8x48xf32>
    %242 = arith.mulf %241, %237 : vector<8x48xf32>
    %243 = arith.addf %235, %242 : vector<8x48xf32>
    %c1_114 = arith.constant 1 : index
    %c2_115 = arith.constant 2 : index
    %c0_116 = arith.constant 0 : index
    %c0_117 = arith.constant 0 : index
    %244 = vector.load %arg3[%c1_114, %c2_115, %c0_116, %c0_117] : memref<3x4x8x50xf32, #tpu.memory_space<vmem>>, vector<1x1x8x48xf32>
    %245 = vector.shape_cast %244 : vector<1x1x8x48xf32> to vector<8x48xf32>
    %246 = vector.broadcast %9 : f32 to vector<8x48xf32>
    %247 = arith.mulf %246, %245 : vector<8x48xf32>
    %248 = arith.addf %240, %247 : vector<8x48xf32>
    %249 = vector.broadcast %18 : f32 to vector<8x48xf32>
    %250 = arith.mulf %249, %245 : vector<8x48xf32>
    %251 = arith.addf %243, %250 : vector<8x48xf32>
    %c1_118 = arith.constant 1 : index
    %c2_119 = arith.constant 2 : index
    %c0_120 = arith.constant 0 : index
    %c1_121 = arith.constant 1 : index
    %252 = vector.load %arg3[%c1_118, %c2_119, %c0_120, %c1_121] : memref<3x4x8x50xf32, #tpu.memory_space<vmem>>, vector<1x1x8x48xf32>
    %253 = vector.shape_cast %252 : vector<1x1x8x48xf32> to vector<8x48xf32>
    %254 = vector.broadcast %10 : f32 to vector<8x48xf32>
    %255 = arith.mulf %254, %253 : vector<8x48xf32>
    %256 = arith.addf %248, %255 : vector<8x48xf32>
    %257 = vector.broadcast %19 : f32 to vector<8x48xf32>
    %258 = arith.mulf %257, %253 : vector<8x48xf32>
    %259 = arith.addf %251, %258 : vector<8x48xf32>
    %c1_122 = arith.constant 1 : index
    %c2_123 = arith.constant 2 : index
    %c0_124 = arith.constant 0 : index
    %c2_125 = arith.constant 2 : index
    %260 = vector.load %arg3[%c1_122, %c2_123, %c0_124, %c2_125] : memref<3x4x8x50xf32, #tpu.memory_space<vmem>>, vector<1x1x8x48xf32>
    %261 = vector.shape_cast %260 : vector<1x1x8x48xf32> to vector<8x48xf32>
    %262 = vector.broadcast %11 : f32 to vector<8x48xf32>
    %263 = arith.mulf %262, %261 : vector<8x48xf32>
    %264 = arith.addf %256, %263 : vector<8x48xf32>
    %265 = vector.broadcast %20 : f32 to vector<8x48xf32>
    %266 = arith.mulf %265, %261 : vector<8x48xf32>
    %267 = arith.addf %259, %266 : vector<8x48xf32>
    %c2_126 = arith.constant 2 : index
    %c2_127 = arith.constant 2 : index
    %c0_128 = arith.constant 0 : index
    %c0_129 = arith.constant 0 : index
    %268 = vector.load %arg3[%c2_126, %c2_127, %c0_128, %c0_129] : memref<3x4x8x50xf32, #tpu.memory_space<vmem>>, vector<1x1x8x48xf32>
    %269 = vector.shape_cast %268 : vector<1x1x8x48xf32> to vector<8x48xf32>
    %270 = vector.broadcast %12 : f32 to vector<8x48xf32>
    %271 = arith.mulf %270, %269 : vector<8x48xf32>
    %272 = arith.addf %264, %271 : vector<8x48xf32>
    %273 = vector.broadcast %21 : f32 to vector<8x48xf32>
    %274 = arith.mulf %273, %269 : vector<8x48xf32>
    %275 = arith.addf %267, %274 : vector<8x48xf32>
    %c2_130 = arith.constant 2 : index
    %c2_131 = arith.constant 2 : index
    %c0_132 = arith.constant 0 : index
    %c1_133 = arith.constant 1 : index
    %276 = vector.load %arg3[%c2_130, %c2_131, %c0_132, %c1_133] : memref<3x4x8x50xf32, #tpu.memory_space<vmem>>, vector<1x1x8x48xf32>
    %277 = vector.shape_cast %276 : vector<1x1x8x48xf32> to vector<8x48xf32>
    %278 = vector.broadcast %13 : f32 to vector<8x48xf32>
    %279 = arith.mulf %278, %277 : vector<8x48xf32>
    %280 = arith.addf %272, %279 : vector<8x48xf32>
    %281 = vector.broadcast %22 : f32 to vector<8x48xf32>
    %282 = arith.mulf %281, %277 : vector<8x48xf32>
    %283 = arith.addf %275, %282 : vector<8x48xf32>
    %c2_134 = arith.constant 2 : index
    %c2_135 = arith.constant 2 : index
    %c0_136 = arith.constant 0 : index
    %c2_137 = arith.constant 2 : index
    %284 = vector.load %arg3[%c2_134, %c2_135, %c0_136, %c2_137] : memref<3x4x8x50xf32, #tpu.memory_space<vmem>>, vector<1x1x8x48xf32>
    %285 = vector.shape_cast %284 : vector<1x1x8x48xf32> to vector<8x48xf32>
    %286 = vector.broadcast %14 : f32 to vector<8x48xf32>
    %287 = arith.mulf %286, %285 : vector<8x48xf32>
    %288 = arith.addf %280, %287 : vector<8x48xf32>
    %289 = vector.broadcast %23 : f32 to vector<8x48xf32>
    %290 = arith.mulf %289, %285 : vector<8x48xf32>
    %291 = arith.addf %283, %290 : vector<8x48xf32>
    %cst_138 = arith.constant 0.000000e+00 : f32
    %292 = vector.broadcast %cst_138 : f32 to vector<8x48xf32>
    %293 = arith.maximumf %288, %292 : vector<8x48xf32>
    %cst_139 = arith.constant 0.000000e+00 : f32
    %294 = vector.broadcast %cst_139 : f32 to vector<8x48xf32>
    %295 = arith.maximumf %291, %294 : vector<8x48xf32>
    %cst_140 = arith.constant dense<0.000000e+00> : vector<8x20xf32>
    %296 = tpu.matmul %293, %1, %cst_140 {dimension_numbers = #tpu.dot_dimension_numbers<[1], [0], [0], [1], [0, 0, 1, 1], [], []>} : vector<8x48xf32>, vector<48x20xf32>, vector<8x20xf32> -> vector<8x20xf32>
    %cst_141 = arith.constant dense<0.000000e+00> : vector<8x20xf32>
    %297 = tpu.matmul %295, %3, %cst_141 {dimension_numbers = #tpu.dot_dimension_numbers<[1], [0], [0], [1], [0, 0, 1, 1], [], []>} : vector<8x48xf32>, vector<48x20xf32>, vector<8x20xf32> -> vector<8x20xf32>
    %298 = arith.addf %296, %297 : vector<8x20xf32>
    %cst_142 = arith.constant 0.000000e+00 : f32
    %299 = vector.broadcast %cst_142 : f32 to vector<8x20xf32>
    %300 = arith.maximumf %298, %299 : vector<8x20xf32>
    %301 = vector.broadcast %4 : vector<1x20xf32> to vector<8x20xf32>
    %302 = arith.mulf %300, %301 : vector<8x20xf32>
    %cst_143 = arith.constant dense<0.000000e+00> : vector<8xf32>
    %303 = vector.multi_reduction <add>, %302, %cst_143 [1] : vector<8x20xf32> to vector<8xf32>
    %304 = vector.shape_cast %303 : vector<8xf32> to vector<8x1xf32>
    %c3_i32 = arith.constant 3 : i32
    %305 = vector.broadcast %c3_i32 : i32 to vector<8x5xi32>
    %306 = arith.cmpi eq, %24, %305 : vector<8x5xi32>
    %cst_144 = arith.constant 0.000000e+00 : f32
    %307 = vector.shape_cast %304 : vector<8x1xf32> to vector<8x1xf32>
    %308 = vector.broadcast %307 : vector<8x1xf32> to vector<8x5xf32>
    %309 = vector.broadcast %cst_144 : f32 to vector<8x5xf32>
    %310 = arith.select %306, %308, %309 : vector<8x5xi1>, vector<8x5xf32>
    %311 = arith.addf %217, %310 : vector<8x5xf32>
    %cst_145 = arith.constant 0.000000e+00 : f32
    %312 = vector.broadcast %cst_145 : f32 to vector<8x48xf32>
    %cst_146 = arith.constant 0.000000e+00 : f32
    %313 = vector.broadcast %cst_146 : f32 to vector<8x48xf32>
    %c0_147 = arith.constant 0 : index
    %c3_148 = arith.constant 3 : index
    %c0_149 = arith.constant 0 : index
    %c0_150 = arith.constant 0 : index
    %314 = vector.load %arg3[%c0_147, %c3_148, %c0_149, %c0_150] : memref<3x4x8x50xf32, #tpu.memory_space<vmem>>, vector<1x1x8x48xf32>
    %315 = vector.shape_cast %314 : vector<1x1x8x48xf32> to vector<8x48xf32>
    %316 = vector.broadcast %6 : f32 to vector<8x48xf32>
    %317 = arith.mulf %316, %315 : vector<8x48xf32>
    %318 = arith.addf %312, %317 : vector<8x48xf32>
    %319 = vector.broadcast %15 : f32 to vector<8x48xf32>
    %320 = arith.mulf %319, %315 : vector<8x48xf32>
    %321 = arith.addf %313, %320 : vector<8x48xf32>
    %c0_151 = arith.constant 0 : index
    %c3_152 = arith.constant 3 : index
    %c0_153 = arith.constant 0 : index
    %c1_154 = arith.constant 1 : index
    %322 = vector.load %arg3[%c0_151, %c3_152, %c0_153, %c1_154] : memref<3x4x8x50xf32, #tpu.memory_space<vmem>>, vector<1x1x8x48xf32>
    %323 = vector.shape_cast %322 : vector<1x1x8x48xf32> to vector<8x48xf32>
    %324 = vector.broadcast %7 : f32 to vector<8x48xf32>
    %325 = arith.mulf %324, %323 : vector<8x48xf32>
    %326 = arith.addf %318, %325 : vector<8x48xf32>
    %327 = vector.broadcast %16 : f32 to vector<8x48xf32>
    %328 = arith.mulf %327, %323 : vector<8x48xf32>
    %329 = arith.addf %321, %328 : vector<8x48xf32>
    %c0_155 = arith.constant 0 : index
    %c3_156 = arith.constant 3 : index
    %c0_157 = arith.constant 0 : index
    %c2_158 = arith.constant 2 : index
    %330 = vector.load %arg3[%c0_155, %c3_156, %c0_157, %c2_158] : memref<3x4x8x50xf32, #tpu.memory_space<vmem>>, vector<1x1x8x48xf32>
    %331 = vector.shape_cast %330 : vector<1x1x8x48xf32> to vector<8x48xf32>
    %332 = vector.broadcast %8 : f32 to vector<8x48xf32>
    %333 = arith.mulf %332, %331 : vector<8x48xf32>
    %334 = arith.addf %326, %333 : vector<8x48xf32>
    %335 = vector.broadcast %17 : f32 to vector<8x48xf32>
    %336 = arith.mulf %335, %331 : vector<8x48xf32>
    %337 = arith.addf %329, %336 : vector<8x48xf32>
    %c1_159 = arith.constant 1 : index
    %c3_160 = arith.constant 3 : index
    %c0_161 = arith.constant 0 : index
    %c0_162 = arith.constant 0 : index
    %338 = vector.load %arg3[%c1_159, %c3_160, %c0_161, %c0_162] : memref<3x4x8x50xf32, #tpu.memory_space<vmem>>, vector<1x1x8x48xf32>
    %339 = vector.shape_cast %338 : vector<1x1x8x48xf32> to vector<8x48xf32>
    %340 = vector.broadcast %9 : f32 to vector<8x48xf32>
    %341 = arith.mulf %340, %339 : vector<8x48xf32>
    %342 = arith.addf %334, %341 : vector<8x48xf32>
    %343 = vector.broadcast %18 : f32 to vector<8x48xf32>
    %344 = arith.mulf %343, %339 : vector<8x48xf32>
    %345 = arith.addf %337, %344 : vector<8x48xf32>
    %c1_163 = arith.constant 1 : index
    %c3_164 = arith.constant 3 : index
    %c0_165 = arith.constant 0 : index
    %c1_166 = arith.constant 1 : index
    %346 = vector.load %arg3[%c1_163, %c3_164, %c0_165, %c1_166] : memref<3x4x8x50xf32, #tpu.memory_space<vmem>>, vector<1x1x8x48xf32>
    %347 = vector.shape_cast %346 : vector<1x1x8x48xf32> to vector<8x48xf32>
    %348 = vector.broadcast %10 : f32 to vector<8x48xf32>
    %349 = arith.mulf %348, %347 : vector<8x48xf32>
    %350 = arith.addf %342, %349 : vector<8x48xf32>
    %351 = vector.broadcast %19 : f32 to vector<8x48xf32>
    %352 = arith.mulf %351, %347 : vector<8x48xf32>
    %353 = arith.addf %345, %352 : vector<8x48xf32>
    %c1_167 = arith.constant 1 : index
    %c3_168 = arith.constant 3 : index
    %c0_169 = arith.constant 0 : index
    %c2_170 = arith.constant 2 : index
    %354 = vector.load %arg3[%c1_167, %c3_168, %c0_169, %c2_170] : memref<3x4x8x50xf32, #tpu.memory_space<vmem>>, vector<1x1x8x48xf32>
    %355 = vector.shape_cast %354 : vector<1x1x8x48xf32> to vector<8x48xf32>
    %356 = vector.broadcast %11 : f32 to vector<8x48xf32>
    %357 = arith.mulf %356, %355 : vector<8x48xf32>
    %358 = arith.addf %350, %357 : vector<8x48xf32>
    %359 = vector.broadcast %20 : f32 to vector<8x48xf32>
    %360 = arith.mulf %359, %355 : vector<8x48xf32>
    %361 = arith.addf %353, %360 : vector<8x48xf32>
    %c2_171 = arith.constant 2 : index
    %c3_172 = arith.constant 3 : index
    %c0_173 = arith.constant 0 : index
    %c0_174 = arith.constant 0 : index
    %362 = vector.load %arg3[%c2_171, %c3_172, %c0_173, %c0_174] : memref<3x4x8x50xf32, #tpu.memory_space<vmem>>, vector<1x1x8x48xf32>
    %363 = vector.shape_cast %362 : vector<1x1x8x48xf32> to vector<8x48xf32>
    %364 = vector.broadcast %12 : f32 to vector<8x48xf32>
    %365 = arith.mulf %364, %363 : vector<8x48xf32>
    %366 = arith.addf %358, %365 : vector<8x48xf32>
    %367 = vector.broadcast %21 : f32 to vector<8x48xf32>
    %368 = arith.mulf %367, %363 : vector<8x48xf32>
    %369 = arith.addf %361, %368 : vector<8x48xf32>
    %c2_175 = arith.constant 2 : index
    %c3_176 = arith.constant 3 : index
    %c0_177 = arith.constant 0 : index
    %c1_178 = arith.constant 1 : index
    %370 = vector.load %arg3[%c2_175, %c3_176, %c0_177, %c1_178] : memref<3x4x8x50xf32, #tpu.memory_space<vmem>>, vector<1x1x8x48xf32>
    %371 = vector.shape_cast %370 : vector<1x1x8x48xf32> to vector<8x48xf32>
    %372 = vector.broadcast %13 : f32 to vector<8x48xf32>
    %373 = arith.mulf %372, %371 : vector<8x48xf32>
    %374 = arith.addf %366, %373 : vector<8x48xf32>
    %375 = vector.broadcast %22 : f32 to vector<8x48xf32>
    %376 = arith.mulf %375, %371 : vector<8x48xf32>
    %377 = arith.addf %369, %376 : vector<8x48xf32>
    %c2_179 = arith.constant 2 : index
    %c3_180 = arith.constant 3 : index
    %c0_181 = arith.constant 0 : index
    %c2_182 = arith.constant 2 : index
    %378 = vector.load %arg3[%c2_179, %c3_180, %c0_181, %c2_182] : memref<3x4x8x50xf32, #tpu.memory_space<vmem>>, vector<1x1x8x48xf32>
    %379 = vector.shape_cast %378 : vector<1x1x8x48xf32> to vector<8x48xf32>
    %380 = vector.broadcast %14 : f32 to vector<8x48xf32>
    %381 = arith.mulf %380, %379 : vector<8x48xf32>
    %382 = arith.addf %374, %381 : vector<8x48xf32>
    %383 = vector.broadcast %23 : f32 to vector<8x48xf32>
    %384 = arith.mulf %383, %379 : vector<8x48xf32>
    %385 = arith.addf %377, %384 : vector<8x48xf32>
    %cst_183 = arith.constant 0.000000e+00 : f32
    %386 = vector.broadcast %cst_183 : f32 to vector<8x48xf32>
    %387 = arith.maximumf %382, %386 : vector<8x48xf32>
    %cst_184 = arith.constant 0.000000e+00 : f32
    %388 = vector.broadcast %cst_184 : f32 to vector<8x48xf32>
    %389 = arith.maximumf %385, %388 : vector<8x48xf32>
    %cst_185 = arith.constant dense<0.000000e+00> : vector<8x20xf32>
    %390 = tpu.matmul %387, %1, %cst_185 {dimension_numbers = #tpu.dot_dimension_numbers<[1], [0], [0], [1], [0, 0, 1, 1], [], []>} : vector<8x48xf32>, vector<48x20xf32>, vector<8x20xf32> -> vector<8x20xf32>
    %cst_186 = arith.constant dense<0.000000e+00> : vector<8x20xf32>
    %391 = tpu.matmul %389, %3, %cst_186 {dimension_numbers = #tpu.dot_dimension_numbers<[1], [0], [0], [1], [0, 0, 1, 1], [], []>} : vector<8x48xf32>, vector<48x20xf32>, vector<8x20xf32> -> vector<8x20xf32>
    %392 = arith.addf %390, %391 : vector<8x20xf32>
    %cst_187 = arith.constant 0.000000e+00 : f32
    %393 = vector.broadcast %cst_187 : f32 to vector<8x20xf32>
    %394 = arith.maximumf %392, %393 : vector<8x20xf32>
    %395 = vector.broadcast %4 : vector<1x20xf32> to vector<8x20xf32>
    %396 = arith.mulf %394, %395 : vector<8x20xf32>
    %cst_188 = arith.constant dense<0.000000e+00> : vector<8xf32>
    %397 = vector.multi_reduction <add>, %396, %cst_188 [1] : vector<8x20xf32> to vector<8xf32>
    %398 = vector.shape_cast %397 : vector<8xf32> to vector<8x1xf32>
    %c4_i32 = arith.constant 4 : i32
    %399 = vector.broadcast %c4_i32 : i32 to vector<8x5xi32>
    %400 = arith.cmpi eq, %24, %399 : vector<8x5xi32>
    %cst_189 = arith.constant 0.000000e+00 : f32
    %401 = vector.shape_cast %398 : vector<8x1xf32> to vector<8x1xf32>
    %402 = vector.broadcast %401 : vector<8x1xf32> to vector<8x5xf32>
    %403 = vector.broadcast %cst_189 : f32 to vector<8x5xf32>
    %404 = arith.select %400, %402, %403 : vector<8x5xi1>, vector<8x5xf32>
    %405 = arith.addf %311, %404 : vector<8x5xf32>
    %c0_190 = arith.constant 0 : index
    %c0_191 = arith.constant 0 : index
    %406 = vector.load %arg4[%c0_190, %c0_191] : memref<8x5xf32, #tpu.memory_space<vmem>>, vector<8x5xf32>
    %407 = vector.broadcast %5 : f32 to vector<8x5xf32>
    %408 = arith.mulf %406, %407 : vector<8x5xf32>
    %409 = arith.addf %405, %408 : vector<8x5xf32>
    %cst_192 = arith.constant dense<0xFF800000> : vector<8xf32>
    %410 = vector.multi_reduction <maximumf>, %409, %cst_192 [1] : vector<8x5xf32> to vector<8xf32>
    %411 = vector.shape_cast %410 : vector<8xf32> to vector<8x1xf32>
    %412 = vector.broadcast %411 : vector<8x1xf32> to vector<8x5xf32>
    %413 = arith.subf %409, %412 : vector<8x5xf32>
    %414 = math.exp %413 : vector<8x5xf32>
    %cst_193 = arith.constant dense<0.000000e+00> : vector<8xf32>
    %415 = vector.multi_reduction <add>, %414, %cst_193 [1] : vector<8x5xf32> to vector<8xf32>
    %416 = vector.shape_cast %415 : vector<8xf32> to vector<8x1xf32>
    %417 = vector.broadcast %416 : vector<8x1xf32> to vector<8x5xf32>
    %418 = arith.divf %414, %417 : vector<8x5xf32>
    %c0_194 = arith.constant 0 : index
    %c0_195 = arith.constant 0 : index
    %419 = vector.load %arg7[%c0_194, %c0_195] : memref<8x5xf32, #tpu.memory_space<vmem>>, vector<8x5xf32>
    tpu.vector_store %arg7[%c0_194, %c0_195], %418 {strides = array<i32>} : memref<8x5xf32, #tpu.memory_space<vmem>>, vector<8x5xf32>,
    return
  }
  func.func @transform_0(%arg0: i32) -> i32 {
    %c0_i32 = arith.constant 0 : i32
    %c0_i32_0 = arith.constant 0 : i32
    return %c0_i32 : i32
  }
  func.func @transform_1(%arg0: i32) -> i32 {
    %c0_i32 = arith.constant 0 : i32
    %c0_i32_0 = arith.constant 0 : i32
    return %c0_i32 : i32
  }
  func.func @transform_2(%arg0: i32) -> (i32, i32, i32, i32) {
    %c0_i32 = arith.constant 0 : i32
    %c0_i32_0 = arith.constant 0 : i32
    %c0_i32_1 = arith.constant 0 : i32
    %c0_i32_2 = arith.constant 0 : i32
    return %c0_i32, %c0_i32_0, %arg0, %c0_i32_1 : i32, i32, i32, i32
  }
  func.func @transform_3(%arg0: i32) -> (i32, i32) {
    %c0_i32 = arith.constant 0 : i32
    %c0_i32_0 = arith.constant 0 : i32
    return %arg0, %c0_i32 : i32, i32
  }
  func.func @transform_4(%arg0: i32) -> (i32, i32, i32) {
    %c0_i32 = arith.constant 0 : i32
    %c0_i32_0 = arith.constant 0 : i32
    %c0_i32_1 = arith.constant 0 : i32
    %c0_i32_2 = arith.constant 0 : i32
    return %c0_i32, %c0_i32_0, %c0_i32_1 : i32, i32, i32
  }
  func.func @transform_5(%arg0: i32) -> (i32, i32) {
    %c0_i32 = arith.constant 0 : i32
    %c0_i32_0 = arith.constant 0 : i32
    %c0_i32_1 = arith.constant 0 : i32
    return %c0_i32, %c0_i32_0 : i32, i32
  }
  func.func @transform_6(%arg0: i32) -> (i32, i32) {
    %c0_i32 = arith.constant 0 : i32
    %c0_i32_0 = arith.constant 0 : i32
    return %arg0, %c0_i32 : i32, i32
  }
}

</mosaic_0001>

<bundles_post_ra>
// kernel: network_cnn_forward.1
= control target key start
LH: loop header
LB: loop body
LE: loop exit
PB: predicated region body
PF: predicated region fallthrough
CT: control target
= control target key end

     0   :  { %12 = vsyncpa [#allocation4], 0  ;;  %s780_s24 = smov [#allocation3]   ;;  %s1218_s0 = inlined_call_operand.vmem [shape: f32[18], index: 0, kind: input, shape index: {}]   ;;  %s1219_s1 = inlined_call_operand.<no memory space> [shape: f32[1], index: 1, kind: input, shape index: {}]   ;;  %s1220_s2 = inlined_call_operand.vmem [shape: f32[3,4,8,50], index: 2, kind: input, shape index: {}]   ;;  %s1221_s3 = inlined_call_operand.vmem [shape: f32[8,5], index: 3, kind: input, shape index: {}]   ;;  %s1222_s4 = inlined_call_operand.vmem [shape: f32[2,48,20], index: 4, kind: input, shape index: {}]   ;;  %s1223_s5 = inlined_call_operand.vmem [shape: f32[1,20], index: 5, kind: input, shape index: {}]   ;;  %s1224_s6 = inlined_call_operand.vmem [shape: f32[8,5], index: 6, kind: output, shape index: {}]  }
   0x1   :  { %s18_s23 = sshll.u32 %s1218_s0, 4  ;;  %s19_s23 = int_to_ptr.vmem [resolvable:$true] %s18_s23 }
   0x2   :  { %21 = dma.vmem_to_smem %s19_s23, 16, %s780_s24, [#allocation4]  }
   0x3   :  { %778 = dma.done.wait [#allocation4], 16  }
   0x4   :  { %779 = vsyncadd [#allocation4], 4294967280 }
   0x5   :  { %36 = sfence }
   0x6   :  { %s722_s25 = sld [smem:[#allocation3 + $0x2]]  ;;  %v825_v0 = vld [vmem:[%s1220_s2 + $0x8] sm:$0xff]  ;;  %v830_v1 = vld [vmem:[%s1220_s2] sm:$0xff]  ;;  %s781_s0 = smov 126   ;;  %v888_v23 = vld [vmem:[%s1220_s2 + $0x18] sm:$0xff]  ;;  %vm183_vm0 = vcmask 392192  }
   0x7   :  { %s721_s26 = sld [smem:[#allocation3 + $0x1]]  ;;  %s782_s9 = smov 127   ;;  %v859_v13 = vld [vmem:[%s1220_s2 + $0x28] sm:$0xff]  ;;  %v893_v24 = vld [vmem:[%s1220_s2 + $0x20] sm:$0xff]  ;;  %v931_v36 = vld [vmem:[%s1220_s2 + $0x10] sm:$0xff]  ;;  %vm235_vm1 = vcmask 162816  }
   0x8   :  { %s731_s27 = sld [smem:[#allocation3 + $0xb]]  ;;  %v917_v32 = vld [vmem:[%s1220_s2 + $0x48] sm:$0xff]  ;;  %v953_v46 = vld [vmem:[%s1220_s2 + $0x38] sm:$0xff]  ;;  %v967_v50 = vld [vmem:[%s1220_s2 + $0x40] sm:$0xff]  ;;  %vm684_vm7 = vcmask 39936  }
   0x9   :  { %s730_s28 = sld [smem:[#allocation3 + $0xa]]  ;;  %v987_v57 = vld [vmem:[%s1220_s2 + $0x30] sm:$0xff]  ;;  %v1003_v62 = vld [vmem:[%s1220_s2 + $0x58] sm:$0xff] }
   0xa   :  { %s724_s10 = sld [smem:[#allocation3 + $0x4]] }
   0xb   :  { %s725_s11 = sld [smem:[#allocation3 + $0x5]] }
   0xc   :  { %v832_v2 = vstv %s722_s25  ;;  %s733_s12 = sld [smem:[#allocation3 + $0xd]] }
   0xd   :  { %v260_v3 = vmul.f32 %v825_v0, %v832_v2  ;;  %v836_v4 = vstv %s721_s26  ;;  %s734_s15 = sld [smem:[#allocation3 + $0xe]]  ;;  %v96_v15 = vmul.f32 %v832_v2, %v830_v1  ;;  %v552_v28 = vmul.f32 %v888_v23, %v832_v2 }
   0xe   :  { %v248_v5 = vmul.f32 %v825_v0, %v836_v4  ;;  %v82_v6 = vmul.f32 %v836_v4, %v830_v1  ;;  %v845_v7 = vstv %s731_s27  ;;  %v540_v26 = vmul.f32 %v888_v23, %v836_v4  ;;  %s727_s20 = sld [smem:[#allocation3 + $0x7]] }
   0xf   :  { %262 = vrot.lane.b32.xlu1 %v260_v3, %s781_s0  ;;  %v88_v8 = vstv %s730_s28  ;;  %v266_v9 = vmul.f32 %v825_v0, %v845_v7  ;;  %v103_v14 = vmul.f32 %v845_v7, %v830_v1  ;;  %v558_v30 = vmul.f32 %v888_v23, %v845_v7  ;;  %s736_s23 = sld [smem:[#allocation3 + $0x10]] }
  0x10   :  { %250 = vrot.lane.b32.xlu0 %v248_v5, %s782_s9  ;;  %84 = vrot.lane.b32.xlu2 %v82_v6, %s782_s9  ;;  %v254_v10 = vmul.f32 %v825_v0, %v88_v8  ;;  %v89_v11 = vmul.f32 %v88_v8, %v830_v1  ;;  %v854_v12 = vstv %s724_s10  ;;  %v546_v25 = vmul.f32 %v888_v23, %v88_v8  ;;  %s737_s26 = sld [smem:[#allocation3 + $0x11]] }
  0x11   :  { %v278_v16 = vmul.f32 %v859_v13, %v854_v12  ;;  %v870_v17 = vstv %s725_s11  ;;  %v118_v27 = vmul.f32 %v893_v24, %v854_v12  ;;  %s728_s27 = sld [smem:[#allocation3 + $0x8]]  ;;  %v394_v38 = vmul.f32 %v931_v36, %v836_v4 }
  0x12   :  { %v872_v18 = vstv %s733_s12  ;;  %v290_v20 = vmul.f32 %v859_v13, %v870_v17  ;;  %v132_v34 = vmul.f32 %v893_v24, %v870_v17  ;;  %v400_v40 = vmul.f32 %v931_v36, %v88_v8  ;;  %s1064_s17 = sld [smem:[#allocation3]] }
  0x13   :  { %v874_v19 = vstv %s734_s15  ;;  %v284_v21 = vmul.f32 %v859_v13, %v872_v18  ;;  %v125_v29 = vmul.f32 %v893_v24, %v872_v18  ;;  %v406_v45 = vmul.f32 %v931_v36, %v832_v2  ;;  %s723_s11 = sld [smem:[#allocation3 + $0x3]] }
  0x14   :  { %v296_v22 = vmul.f32 %v859_v13, %v874_v19  ;;  %v912_v31 = vstv %s727_s20  ;;  %v139_v33 = vmul.f32 %v893_v24, %v874_v19  ;;  %v570_v47 = vmul.f32 %v953_v46, %v854_v12  ;;  %s732_s12 = sld [smem:[#allocation3 + $0xc]] }
  0x15   :  { %v308_v35 = vmul.f32 %v917_v32, %v912_v31  ;;  %v933_v37 = vstv %s736_s23  ;;  %v412_v48 = vmul.f32 %v931_v36, %v845_v7  ;;  %v576_v49 = vmul.f32 %v953_v46, %v872_v18  ;;  %v1023_v7 = vld [vmem:[%s1220_s2 + $0x50] sm:$0xff]  ;;  %s729_s2 = sld [smem:[#allocation3 + $0x9]] }
  0x16   :  { %v314_v39 = vmul.f32 %v917_v32, %v933_v37  ;;  %v174_v41 = vstv %s737_s26  ;;  %v161_v51 = vmul.f32 %v967_v50, %v933_v37  ;;  %v154_v52 = vmul.f32 %v967_v50, %v912_v31 }
  0x17   :  { %268 = vrot.lane.b32.xlu1 %v266_v9, %s781_s0  ;;  %v167_v42 = vstv %s728_s27  ;;  %v326_v43 = vmul.f32 %v917_v32, %v174_v41  ;;  %v582_v53 = vmul.f32 %v953_v46, %v870_v17  ;;  %v588_v55 = vmul.f32 %v953_v46, %v874_v19 }
  0x18   :  { %256 = vrot.lane.b32.xlu0 %v254_v10, %s782_s9  ;;  %91 = vrot.lane.b32.xlu2 %v89_v11, %s782_s9  ;;  %v320_v44 = vmul.f32 %v917_v32, %v167_v42  ;;  %v168_v54 = vmul.f32 %v967_v50, %v167_v42  ;;  %v175_v56 = vmul.f32 %v967_v50, %v174_v41 }
  0x19   :  { %v430_v59 = vmul.f32 %v987_v57, %v872_v18  ;;  %v424_v60 = vmul.f32 %v987_v57, %v854_v12  ;;  %v436_v61 = vmul.f32 %v987_v57, %v870_v17  ;;  %v600_v2 = vmul.f32 %v1003_v62, %v912_v31 }
  0x1a   :  { %v442_v3 = vmul.f32 %v987_v57, %v874_v19  ;;  %v606_v4 = vmul.f32 %v1003_v62, %v933_v37  ;;  %v618_v6 = vmul.f32 %v1003_v62, %v174_v41  ;;  %v612_v8 = vmul.f32 %v1003_v62, %v167_v42 }
  0x1b   :  { %v454_v9 = vmul.f32 %v1023_v7, %v912_v31  ;;  %v466_v12 = vmul.f32 %v1023_v7, %v167_v42  ;;  %v1072_v31 = vstv %s729_s2 }
  0x1f   :  { %105 = vrot.lane.b32.xlu1 %v103_v14, %s781_s0  ;;  %v460_v14 = vmul.f32 %v1023_v7, %v933_v37 }
  0x20   :  { %98 = vrot.lane.b32.xlu0 %v96_v15, %s781_s0  ;;  %280 = vrot.lane.b32.xlu2 %v278_v16, %s782_s9  ;;  %v472_v15 = vmul.f32 %v1023_v7, %v174_v41 }
  0x27   :  { %292 = vrot.lane.b32.xlu1 %v290_v20, %s781_s0 }
  0x28   :  { %286 = vrot.lane.b32.xlu0 %v284_v21, %s782_s9  ;;  %298 = vrot.lane.b32.xlu2 %v296_v22, %s781_s0 }
  0x2f   :  { %548 = vrot.lane.b32.xlu1 %v546_v25, %s782_s9 }
  0x30   :  { %542 = vrot.lane.b32.xlu0 %v540_v26, %s782_s9  ;;  %120 = vrot.lane.b32.xlu2 %v118_v27, %s782_s9  ;;  %v720_v27 = vld [vmem:[%s1222_s4 + $0x58] sm:$0xff] }
  0x31   :  { %347 = vmatpush.msra.mxu2 %v720_v27  ;;  %197 = vmatpush.msra.mxu0 %v720_v27 }
  0x37   :  { %554 = vrot.lane.b32.xlu1 %v552_v28, %s781_s0  ;;  %v42_v28 = vld [vmem:[%s1222_s4 + $0x28] sm:$0xff] }
  0x38   :  { %127 = vrot.lane.b32.xlu0 %v125_v29, %s782_s9  ;;  %560 = vrot.lane.b32.xlu2 %v558_v30, %s781_s0  ;;  %v719_v29 = vld [vmem:[%s1222_s4 + $0x50] sm:$0xff]  ;;  %v41_v30 = vld [vmem:[%s1222_s4 + $0x20] sm:$0xff] }
  0x39   :  { %370 = vmatpush.msra.mxu3 %v42_v28  ;;  %220 = vmatpush.msra.mxu1 %v42_v28 }
  0x3a   :  { %348 = vmatpush.msra.mxu2 %v719_v29  ;;  %198 = vmatpush.msra.mxu0 %v719_v29 }
  0x3b   :  { %371 = vmatpush.msra.mxu3 %v41_v30  ;;  %221 = vmatpush.msra.mxu1 %v41_v30 }
  0x3f   :  { %141 = vrot.lane.b32.xlu1 %v139_v33, %s781_s0  ;;  %v718_v33 = vld [vmem:[%s1222_s4 + $0x48] sm:$0xff] }
  0x40   :  { %134 = vrot.lane.b32.xlu0 %v132_v34, %s781_s0  ;;  %310 = vrot.lane.b32.xlu2 %v308_v35, %s782_s9  ;;  %v40_v34 = vld [vmem:[%s1222_s4 + $0x18] sm:$0xff]  ;;  %v538_v35 = vmul.f32 %v888_v23, %v1072_v31 }
  0x41   :  { %349 = vmatpush.msra.mxu2 %v718_v33  ;;  %372 = vmatpush.msra.mxu3 %v40_v34 }
  0x42   :  { %199 = vmatpush.msra.mxu0 %v718_v33  ;;  %222 = vmatpush.msra.mxu1 %v40_v34 }
  0x47   :  { %396 = vrot.lane.b32.xlu1 %v394_v38, %s782_s9  ;;  %v717_v38 = vld [vmem:[%s1222_s4 + $0x40] sm:$0xff] }
  0x48   :  { %316 = vrot.lane.b32.xlu0 %v314_v39, %s782_s9  ;;  %402 = vrot.lane.b32.xlu2 %v400_v40, %s782_s9  ;;  %v39_v39 = vld [vmem:[%s1222_s4 + $0x10] sm:$0xff] }
  0x49   :  { %350 = vmatpush.msra.mxu2 %v717_v38  ;;  %373 = vmatpush.msra.mxu3 %v39_v39 }
  0x4a   :  { %200 = vmatpush.msra.mxu0 %v717_v38  ;;  %223 = vmatpush.msra.mxu1 %v39_v39 }
  0x4f   :  { %328 = vrot.lane.b32.xlu1 %v326_v43, %s781_s0  ;;  %v716_v43 = vld [vmem:[%s1222_s4 + $0x38] sm:$0xff] }
  0x50   :  { %322 = vrot.lane.b32.xlu0 %v320_v44, %s781_s0  ;;  %408 = vrot.lane.b32.xlu2 %v406_v45, %s781_s0  ;;  %v38_v44 = vld [vmem:[%s1222_s4 + $0x8] sm:$0xff]  ;;  %v1099_v45 = vstv %s1064_s17 }
  0x51   :  { %351 = vmatpush.msra.mxu2 %v716_v43  ;;  %374 = vmatpush.msra.mxu3 %v38_v44 }
  0x52   :  { %201 = vmatpush.msra.mxu0 %v716_v43  ;;  %224 = vmatpush.msra.mxu1 %v38_v44 }
  0x57   :  { %572 = vrot.lane.b32.xlu1 %v570_v47, %s782_s9 }
  0x58   :  { %414 = vrot.lane.b32.xlu0 %v412_v48, %s781_s0  ;;  %578 = vrot.lane.b32.xlu2 %v576_v49, %s782_s9  ;;  %v715_v48 = vld [vmem:[%s1222_s4 + $0x30] sm:$0xff]  ;;  %v37_v49 = vld [vmem:[%s1222_s4] sm:$0xff]  ;;  %s726_s4 = sld [smem:[#allocation3 + $0x6]] }
  0x59   :  { %352 = vmatpush.msra.mxu2 %v715_v48  ;;  %375 = vmatpush.msra.mxu3 %v37_v49 }
  0x5a   :  { %202 = vmatpush.msra.mxu0 %v715_v48  ;;  %225 = vmatpush.msra.mxu1 %v37_v49 }
  0x5b   :  { %639 = vmatpush.msrb.mxu2 %v720_v27  ;;  %662 = vmatpush.msrb.mxu3 %v42_v28 }
  0x5c   :  { %516 = vmatpush.msrb.mxu1 %v42_v28  ;;  %493 = vmatpush.msrb.mxu0 %v720_v27 }
  0x5d   :  { %640 = vmatpush.msrb.mxu2 %v719_v29  ;;  %663 = vmatpush.msrb.mxu3 %v41_v30 }
  0x5e   :  { %517 = vmatpush.msrb.mxu1 %v41_v30  ;;  %494 = vmatpush.msrb.mxu0 %v719_v29 }
  0x5f   :  { %163 = vrot.lane.b32.xlu1 %v161_v51, %s782_s9  ;;  %v244_v51 = vmul.f32 %v825_v0, %v1099_v45  ;;  %641 = vmatpush.msrb.mxu2 %v718_v33 }
  0x60   :  { %156 = vrot.lane.b32.xlu0 %v154_v52, %s782_s9  ;;  %584 = vrot.lane.b32.xlu2 %v582_v53, %s781_s0  ;;  %v246_v52 = vmul.f32 %v825_v0, %v1072_v31  ;;  %v1121_v0 = vstv %s732_s12 }
  0x61   :  { %664 = vmatpush.msrb.mxu3 %v40_v34  ;;  %518 = vmatpush.msrb.mxu1 %v40_v34 }
  0x62   :  { %495 = vmatpush.msrb.mxu0 %v718_v33  ;;  %642 = vmatpush.msrb.mxu2 %v717_v38 }
  0x63   :  { %665 = vmatpush.msrb.mxu3 %v39_v39  ;;  %519 = vmatpush.msrb.mxu1 %v39_v39 }
  0x64   :  { %496 = vmatpush.msrb.mxu0 %v717_v38  ;;  %643 = vmatpush.msrb.mxu2 %v716_v43 }
  0x65   :  { %666 = vmatpush.msrb.mxu3 %v38_v44  ;;  %520 = vmatpush.msrb.mxu1 %v38_v44 }
  0x66   :  { %497 = vmatpush.msrb.mxu0 %v716_v43  ;;  %644 = vmatpush.msrb.mxu2 %v715_v48  ;;  %v115_v43 = vmul.f32 %v893_v24, %v1121_v0 }
  0x67   :  { %170 = vrot.lane.b32.xlu1 %v168_v54, %s781_s0  ;;  %667 = vmatpush.msrb.mxu3 %v37_v49 }
  0x68   :  { %590 = vrot.lane.b32.xlu0 %v588_v55, %s781_s0  ;;  %177 = vrot.lane.b32.xlu2 %v175_v56, %s781_s0 }
  0x69   :  { %521 = vmatpush.msrb.mxu1 %v37_v49  ;;  %498 = vmatpush.msrb.mxu0 %v715_v48 }
  0x6a   :  { %v990_v58 = vpop.permute.xlu2 %84 }
  0x6f   :  { %432 = vrot.lane.b32.xlu1 %v430_v59, %s782_s9  ;;  %v1119_v59 = vstv %s723_s11 }
  0x70   :  { %426 = vrot.lane.b32.xlu0 %v424_v60, %s782_s9  ;;  %438 = vrot.lane.b32.xlu2 %v436_v61, %s781_s0 }
  0x72   :  { %v1006_v63 = vpop.permute.xlu2 %91 }
  0x77   :  { %602 = vrot.lane.b32.xlu1 %v600_v2, %s782_s9  ;;  %v274_v2 = vmul.f32 %v859_v13, %v1119_v59 }
  0x78   :  { %444 = vrot.lane.b32.xlu0 %v442_v3, %s781_s0  ;;  %608 = vrot.lane.b32.xlu2 %v606_v4, %s782_s9  ;;  %v276_v4 = vmul.f32 %v859_v13, %v1121_v0 }
  0x7a   :  { %v1017_v5 = vpop.permute.xlu2 %280 }
  0x7f   :  { %620 = vrot.lane.b32.xlu1 %v618_v6, %s781_s0 }
  0x80   :  { %614 = vrot.lane.b32.xlu0 %v612_v8, %s781_s0  ;;  %456 = vrot.lane.b32.xlu2 %v454_v9, %s782_s9 }
  0x81   :  { %v1031_v10 = vpop.permute.xlu1 %262 }
  0x82   :  { %v1033_v11 = vpop.permute.xlu0 %250  ;;  %v1039_v16 = vpop.permute.xlu2 %298 }
  0x83   :  { %v253_v55 = vadd.f32 %v1033_v11, %v244_v51 }
  0x85   :  { %v265_v61 = vadd.f32 %v1031_v10, %v253_v55 }
  0x87   :  { %468 = vrot.lane.b32.xlu1 %v466_v12, %s781_s0  ;;  %v275_v9 = vadd.f32 %v274_v2, %v265_v61  ;;  %v1132_v12 = vstv %s726_s4 }
  0x88   :  { %462 = vrot.lane.b32.xlu0 %v460_v14, %s782_s9  ;;  %474 = vrot.lane.b32.xlu2 %v472_v15, %s781_s0  ;;  %s735_s9 = sld [smem:[#allocation3 + $0xf]] }
  0x89   :  { %v1044_v17 = vpop.permute.xlu1 %268  ;;  %v283_v14 = vadd.f32 %v1017_v5, %v275_v9  ;;  %v79_v5 = vmul.f32 %v1072_v31, %v830_v1 }
  0x8a   :  { %v1046_v18 = vpop.permute.xlu0 %256  ;;  %v1048_v19 = vpop.permute.xlu2 %120 }
  0x8b   :  { %v259_v56 = vadd.f32 %v1046_v18, %v246_v52  ;;  %v304_v18 = vmul.f32 %v917_v32, %v1132_v12  ;;  %v94_v38 = vadd.f32 %v1006_v63, %v79_v5 }
  0x8d   :  { %v271_v3 = vadd.f32 %v1044_v17, %v259_v56 }
  0x8e   :  { %v1137_v13 = vstv %s735_s9 }
  0x8f   :  { %v277_v10 = vadd.f32 %v276_v4, %v271_v3  ;;  %v306_v28 = vmul.f32 %v917_v32, %v1137_v13 }
  0x91   :  { %v1050_v20 = vpop.permute.xlu1 %105 }
  0x92   :  { %v1052_v21 = vpop.permute.xlu0 %98  ;;  %v561_v22 = vpop.permute.xlu2 %560  ;;  %v108_v32 = vadd.f32 %v1050_v20, %v94_v38 }
  0x94   :  { %v116_v49 = vadd.f32 %v115_v43, %v108_v32 }
  0x99   :  { %v1054_v25 = vpop.permute.xlu1 %292 }
  0x9a   :  { %v1056_v26 = vpop.permute.xlu0 %286  ;;  %v1090_v42 = vpop.permute.xlu2 %310  ;;  %v295_v17 = vadd.f32 %v1054_v25, %v283_v14 }
  0x9b   :  { %v289_v11 = vadd.f32 %v1056_v26, %v277_v10 }
  0x9c   :  { %v305_v29 = vadd.f32 %v304_v18, %v295_v17 }
  0x9d   :  { %v301_v27 = vadd.f32 %v1039_v16, %v289_v11 }
  0x9e   :  { %v313_v34 = vadd.f32 %v1090_v42, %v305_v29  ;;  %v568_v29 = vmul.f32 %v953_v46, %v1121_v0 }
  0x9f   :  { %v307_v30 = vadd.f32 %v306_v28, %v301_v27 }
  0xa1   :  { %v549_v37 = vpop.permute.xlu1 %548 }
  0xa2   :  { %v551_v40 = vadd.f32 %v549_v37, %v538_v35  ;;  %v1088_v41 = vpop.permute.xlu0 %542  ;;  %v1123_v60 = vpop.permute.xlu2 %402  ;;  %v76_v37 = vmul.f32 %v1099_v45, %v830_v1  ;;  %v112_v1 = vmul.f32 %v893_v24, %v1119_v59  ;;  %v148_v24 = vmul.f32 %v967_v50, %v1132_v12 }
  0xa4   :  { %v1101_v47 = vadd.f32 %v561_v22, %v551_v40  ;;  %v87_v42 = vadd.f32 %v990_v58, %v76_v37  ;;  %v151_v58 = vmul.f32 %v967_v50, %v1137_v13 }
  0xa6   :  { %v101_v63 = vadd.f32 %v1052_v21, %v87_v42  ;;  %v569_v37 = vadd.f32 %v568_v29, %v1101_v47 }
  0xa8   :  { %v113_v56 = vadd.f32 %v112_v1, %v101_v63 }
  0xa9   :  { %v1113_v53 = vpop.permute.xlu1 %554 }
  0xaa   :  { %v1115_v54 = vpop.permute.xlu0 %127  ;;  %v1135_v15 = vpop.permute.xlu2 %408  ;;  %v123_v2 = vadd.f32 %v1048_v19, %v113_v56  ;;  %v536_v19 = vmul.f32 %v888_v23, %v1099_v45 }
  0xab   :  { %v130_v20 = vadd.f32 %v1115_v54, %v116_v49  ;;  %v450_v49 = vmul.f32 %v1023_v7, %v1132_v12 }
  0xac   :  { %v545_v50 = vadd.f32 %v1088_v41, %v536_v19  ;;  %v420_v41 = vmul.f32 %v987_v57, %v1119_v59 }
  0xb1   :  { %v142_v6 = vpop.permute.xlu1 %141 }
  0xb2   :  { %v135_v8 = vpop.permute.xlu0 %134  ;;  %v579_v35 = vpop.permute.xlu2 %578  ;;  %v144_v61 = vadd.f32 %v142_v6, %v130_v20 }
  0xb3   :  { %v137_v9 = vadd.f32 %v135_v8, %v123_v2  ;;  %v390_v8 = vmul.f32 %v931_v36, %v1099_v45  ;;  %v581_v45 = vadd.f32 %v579_v35, %v569_v37 }
  0xb4   :  { %v152_v3 = vadd.f32 %v151_v58, %v144_v61 }
  0xb5   :  { %v149_v54 = vadd.f32 %v148_v24, %v137_v9 }
  0xb9   :  { %v397_v22 = vpop.permute.xlu1 %396 }
  0xba   :  { %v317_v26 = vpop.permute.xlu0 %316  ;;  %v585_v51 = vpop.permute.xlu2 %584 }
  0xbb   :  { %v319_v33 = vadd.f32 %v317_v26, %v307_v30  ;;  %v557_v30 = vadd.f32 %v1113_v53, %v545_v50 }
  0xc1   :  { %v329_v25 = vpop.permute.xlu1 %328 }
  0xc2   :  { %v331_v16 = vadd.f32 %v329_v25, %v319_v33  ;;  %v323_v39 = vpop.permute.xlu0 %322  ;;  %v178_v11 = vpop.permute.xlu2 %177  ;;  %v566_v33 = vmul.f32 %v953_v46, %v1119_v59  ;;  %v399_v25 = vadd.f32 %v397_v22, %v390_v8  ;;  %v598_v46 = vmul.f32 %v1003_v62, %v1137_v13 }
  0xc3   :  { %v325_v40 = vadd.f32 %v323_v39, %v313_v34  ;;  %v392_v39 = vmul.f32 %v931_v36, %v1072_v31  ;;  %v422_v36 = vmul.f32 %v987_v57, %v1121_v0  ;;  %v452_v57 = vmul.f32 %v1023_v7, %v1137_v13 }
  0xc4   :  { %v333_v44 = vmax.f32 %v331_v16, 0.0  ;;  %v567_v38 = vadd.f32 %v566_v33, %v557_v30  ;;  %v411_v16 = vadd.f32 %v1135_v15, %v399_v25  ;;  %v596_v15 = vmul.f32 %v1003_v62, %v1132_v12 }
  0xc5   :  { %v332_v48 = vmax.f32 %v325_v40, 0.0  ;;  %v405_v47 = vadd.f32 %v1123_v60, %v392_v39 }
  0xc6   :  { %745 = vmatmul.msk.f32.vlgmr.msra.gmra.mxu2 %vm183_vm0, %v333_v44  ;;  %v421_v43 = vadd.f32 %v420_v41, %v411_v16 }
  0xc7   :  { %746 = vmatmul.msk.f32.vlgmr.msra.gmra.mxu3 %vm183_vm0, %v332_v48 }
  0xc9   :  { %v573_v52 = vpop.permute.xlu1 %572 }
  0xca   :  { %v415_v55 = vpop.permute.xlu0 %414  ;;  %v439_v5 = vpop.permute.xlu2 %438  ;;  %v575_v40 = vadd.f32 %v573_v52, %v567_v38 }
  0xcb   :  { %v417_v42 = vadd.f32 %v415_v55, %v405_v47 }
  0xcc   :  { %v587_v35 = vadd.f32 %v585_v51, %v575_v40 }
  0xcd   :  { %v423_v52 = vadd.f32 %v422_v36, %v417_v42  ;;  %v680_v36 = vld [vmem:[%s1221_s3] sm:$0xff] }
  0xce   :  { %v597_v31 = vadd.f32 %v596_v15, %v587_v35 }
  0xd1   :  { %v164_v4 = vpop.permute.xlu1 %163 }
  0xd2   :  { %v166_v10 = vadd.f32 %v164_v4, %v152_v3  ;;  %v157_v21 = vpop.permute.xlu0 %156  ;;  %v609_v22 = vpop.permute.xlu2 %608 }
  0xd3   :  { %v159_v18 = vadd.f32 %v157_v21, %v149_v54 }
  0xd4   :  { %v180_v14 = vadd.f32 %v178_v11, %v166_v10 }
  0xd6   :  { %v182_v17 = vmax.f32 %v180_v14, 0.0 }
  0xd8   :  { %740 = vmatmul.msk.f32.vlgmr.msra.gmra.mxu0 %vm183_vm0, %v182_v17 }
  0xd9   :  { %v171_v6 = vpop.permute.xlu1 %170 }
  0xda   :  { %v173_v27 = vadd.f32 %v171_v6, %v159_v18  ;;  %v591_v28 = vpop.permute.xlu0 %590  ;;  %v457_v60 = vpop.permute.xlu2 %456  ;;  %v761_v6 = vld [vmem:[%s1223_s5] ss:$0 sm:$0xff] }
  0xdb   :  { %v593_v53 = vadd.f32 %v591_v28, %v581_v45 }
  0xdc   :  { %v181_v26 = vmax.f32 %v173_v27, 0.0 }
  0xdd   :  { %v599_v48 = vadd.f32 %v598_v46, %v593_v53  ;;  %v70_v46 = vlaneseq }
  0xde   :  { %741 = vmatmul.msk.f32.vlgmr.msra.gmra.mxu1 %vm183_vm0, %v181_v26 }
  0xdf   :  { %v611_v1 = vadd.f32 %v609_v22, %v599_v48 }
  0xe1   :  { %v433_v34 = vpop.permute.xlu1 %432 }
  0xe2   :  { %v427_v23 = vpop.permute.xlu0 %426  ;;  %v435_v58 = vadd.f32 %v433_v34, %v423_v52  ;;  %v475_v21 = vpop.permute.xlu2 %474 }
  0xe3   :  { %v429_v59 = vadd.f32 %v427_v23, %v421_v43  ;;  %v783_v43 = vmov 0.0  }
  0xe5   :  { %v441_v63 = vadd.f32 %v439_v5, %v429_v59 }
  0xe7   :  { %v451_v2 = vadd.f32 %v450_v49, %v441_v63 }
  0xe9   :  { %v603_v32 = vpop.permute.xlu1 %602  ;;  %v459_v0 = vadd.f32 %v457_v60, %v451_v2 }
  0xea   :  { %v445_v44 = vpop.permute.xlu0 %444  ;;  %v605_v20 = vadd.f32 %v603_v32, %v597_v31  ;;  %v71_v32 = vand.u32 127, %v70_v46  ;;  %v681_v31 = vstv %s1219_s1 }
  0xeb   :  { %v447_v55 = vadd.f32 %v445_v44, %v435_v58  ;;  %v682_v52 = vmul.f32 %v681_v31, %v680_v36 }
  0xec   :  { %vm72_vm2 = vcmp.eq.s32.totalorder %v71_v32, 0  ;;  %vm239_vm3 = vcmp.eq.s32.totalorder %v71_v32, 1  ;;  %vm385_vm4 = vcmp.eq.s32.totalorder %v71_v32, 2  ;;  %vm531_vm5 = vcmp.eq.s32.totalorder %v71_v32, 3 }
  0xed   :  { %v453_v9 = vadd.f32 %v452_v57, %v447_v55  ;;  %v73_v44 = vsel %vm72_vm2, 1.0, %v783_v43  ;;  %vm677_vm6 = vcmp.eq.s32.totalorder %v71_v32, 4 }
  0xf1   :  { %v621_v56 = vpop.permute.xlu1 %620 }
  0xf2   :  { %v623_v51 = vadd.f32 %v621_v56, %v611_v1  ;;  %v615_v61 = vpop.permute.xlu0 %614 }
  0xf3   :  { %v617_v62 = vadd.f32 %v615_v61, %v605_v20 }
  0xf4   :  { %v625_v3 = vmax.f32 %v623_v51, 0.0 }
  0xf5   :  { %v624_v4 = vmax.f32 %v617_v62, 0.0 }
  0xf6   :  { %755 = vmatmul.msk.f32.vlgmr.msrb.gmra.mxu2 %vm183_vm0, %v625_v3 }
  0xf7   :  { %756 = vmatmul.msk.f32.vlgmr.msrb.gmra.mxu3 %vm183_vm0, %v624_v4 }
  0xf9   :  { %v469_v12 = vpop.permute.xlu1 %468 }
  0xfa   :  { %v471_v10 = vadd.f32 %v469_v12, %v459_v0  ;;  %v463_v24 = vpop.permute.xlu0 %462 }
  0xfb   :  { %v465_v11 = vadd.f32 %v463_v24, %v453_v9 }
  0xfc   :  { %v478_v14 = vmax.f32 %v471_v10, 0.0 }
  0xfd   :  { %v477_v17 = vadd.f32 %v475_v21, %v465_v11 }
  0xfe   :  { %751 = vmatmul.msk.f32.vlgmr.msrb.gmra.mxu1 %vm183_vm0, %v478_v14 }
  0xff   :  { %v479_v54 = vmax.f32 %v477_v17, 0.0 }
 0x101   :  { %750 = vmatmul.msk.f32.vlgmr.msrb.gmra.mxu0 %vm183_vm0, %v479_v54 }
 0x149   :  { %v354_v18 = vpop.f32.mrf.mxu2 }
 0x14a   :  { %v377_v7 = vpop.f32.mrf.mxu3 }
 0x14b   :  { %v378_v13 = vadd.f32 %v377_v7, %v354_v18 }
 0x14d   :  { %v380_v27 = vmax.f32 %v378_v13, 0.0 }
 0x14f   :  { %v381_v28 = vmul.f32 %v761_v6, %v380_v27 }
 0x151   :  { %v382_v19 = vsel %vm235_vm1, %v381_v28, 0.0 }
 0x152   :  { %383 = vadd.xlane.f32.xlu1 %v382_v19 }
 0x155   :  { %v204_v26 = vpop.f32.mrf.mxu0 }
 0x15b   :  { %v227_v8 = vpop.f32.mrf.mxu1 }
 0x15c   :  { %v228_v50 = vadd.f32 %v227_v8, %v204_v26 }
 0x15e   :  { %v230_v29 = vmax.f32 %v228_v50, 0.0 }
 0x160   :  { %v234_v5 = vmul.f32 %v761_v6, %v230_v29 }
 0x162   :  { %v236_v30 = vsel %vm235_vm1, %v234_v5, 0.0 }
 0x163   :  { %237 = vadd.xlane.f32.xlu0 %v236_v30 }
 0x179   :  { %v646_v33 = vpop.f32.mrf.mxu2 }
 0x17a   :  { %v669_v34 = vpop.f32.mrf.mxu3 }
 0x17b   :  { %v523_v25 = vpop.f32.mrf.mxu1  ;;  %v670_v38 = vadd.f32 %v669_v34, %v646_v33 }
 0x17d   :  { %v672_v41 = vmax.f32 %v670_v38, 0.0 }
 0x17e   :  { %v500_v23 = vpop.f32.mrf.mxu0 }
 0x17f   :  { %v524_v37 = vadd.f32 %v523_v25, %v500_v23  ;;  %v673_v40 = vmul.f32 %v761_v6, %v672_v41 }
 0x181   :  { %v526_v45 = vmax.f32 %v524_v37, 0.0  ;;  %v674_v53 = vsel %vm235_vm1, %v673_v40, 0.0 }
 0x183   :  { %v527_v16 = vmul.f32 %v761_v6, %v526_v45 }
 0x185   :  { %v528_v39 = vsel %vm235_vm1, %v527_v16, 0.0 }
 0x186   :  { %529 = vadd.xlane.f32.xlu2 %v528_v39 }
 0x18e   :  { %675 = vadd.xlane.f32.xlu2 %v674_v53 }
 0x1c5   :  { %v384_v15 = vpop.xlane.xlu1 %383 }
 0x1c6   :  { %v386_v59 = vsel %vm385_vm4, %v384_v15, 0.0 }
 0x1d6   :  { %v238_v22 = vpop.xlane.xlu0 %237 }
 0x1d7   :  { %v240_v47 = vsel %vm239_vm3, %v238_v22, 0.0 }
 0x1d8   :  { %v241_v48 = vadd.f32 %v240_v47, %v73_v44 }
 0x1da   :  { %v387_v1 = vadd.f32 %v386_v59, %v241_v48 }
 0x1f9   :  { %v530_v35 = vpop.xlane.xlu2 %529 }
 0x1fa   :  { %v532_v42 = vsel %vm531_vm5, %v530_v35, 0.0 }
 0x1fb   :  { %v533_v63 = vadd.f32 %v532_v42, %v387_v1 }
 0x201   :  { %v676_v49 = vpop.xlane.xlu2 %675 }
 0x202   :  { %v678_v20 = vsel %vm677_vm6, %v676_v49, 0.0 }
 0x203   :  { %v679_v56 = vadd.f32 %v678_v20, %v533_v63 }
 0x205   :  { %v683_v60 = vadd.f32 %v682_v52, %v679_v56 }
 0x207   :  { %v685_v51 = vsel %vm684_vm7, %v683_v60, -inf }
 0x208   :  { %686 = vmax.xlane.f32.xlu0 %v685_v51 }
 0x27b   :  { %v687_v61 = vpop.xlane.xlu0 %686 }
 0x27c   :  { %v688_v58 = vsub.f32 %v683_v60, %v687_v61 }
 0x27e   :  { %v689_v62 = vmul.f32 1.442695, %v688_v58 }
 0x280   :  { %762 = vpow2.f32 %v689_v62 }
 0x286   :  { %v763_v2 = vpop.eup %762 }
 0x287   :  { %v691_v3 = vsel %vm684_vm7, %v763_v2, 0.0 }
 0x288   :  { %692 = vadd.xlane.f32.xlu1 %v691_v3 }
 0x2fb   :  { %v693_v55 = vpop.xlane.xlu1 %692 }
 0x2fc   :  { %764 = vrcp.f32 %v693_v55  ;;  %v705_v12 = vand.u32 2147483648, %v693_v55  ;;  %v703_v10 = vand.u32 2147483647, %v693_v55  ;;  %vm699_vm9 = vweird.f32 %v693_v55 }
 0x2fe   :  { %v706_v21 = vor.u32 1.1754944e-38, %v705_v12  ;;  %vm704_vm11 = vcmp.eq.f32.partialorder %v703_v10, 8.507059e+37 }
 0x302   :  { %v765_v4 = vpop.eup %764 }
 0x303   :  { %v695_v57 = vmul.f32 %v765_v4, %v693_v55  ;;  %vm700_vm8 = vweird.f32 %v765_v4 }
 0x304   :  { %vm701_vm10 = vmor %vm699_vm9, %vm700_vm8 }
 0x305   :  { %v696_v0 = vsub.f32 1.0, %v695_v57 }
 0x307   :  { %v697_v9 = vmul.f32 %v765_v4, %v696_v0 }
 0x309   :  { %v698_v24 = vadd.f32 %v765_v4, %v697_v9 }
 0x30b   :  { %v702_v11 = vsel %vm701_vm10, %v765_v4, %v698_v24 }
 0x30c   :  { %v707_v14 = vsel %vm704_vm11, %v706_v21, %v702_v11 }
 0x30d   :  { %v708_v17 = vmul.f32 %v763_v2, %v707_v14 }
 0x30f   :  { %709 = vst.msk [vmem:[%s1224_s6] sm:$0xff] %vm684_vm7, %v708_v17 }
 0x310   :  { %714 = vsyncpa [#allocation4], 1 }

</bundles_post_ra>
